<compile_context>
chip_gen: v7x
topology: tpu7x:2x2x1
jax: 0.10.0
libtpu: 0.0.40
codegen_flags: <defaults>
</compile_context>

<pallas_src>
import numpy as np

import jax
import jax.numpy as jnp
from jax.experimental import pallas as pl
from jax.experimental.pallas import tpu as pltpu

LEAKY_SLOPE = 0.2
BN_EPS = 1e-5
LANES = 128   # TPU lane width; channel dims are padded to this


# ---------------------------------------------------------------------------
# Single fused Pallas kernel: conv1 -> conv2+BN -> conv3+flatten+linear+sigmoid
# ---------------------------------------------------------------------------
def _disc_kernel(c0_ref, p1_ref, w1m_ref, b1_ref, g_ref, w2t_ref,
                 gamma_ref, beta_ref, wf_ref, sel_ref, out_ref):
    # --- Conv2d(1, 64, k=4, s=2, p=1) + LeakyReLU(0.2) ----------------------
    # p1 = im2col of the *network input* (rows = N*OH1*OW1, cols = KH*KW*1).
    # Conv1 weights/bias zero-padded 64 -> 128 output channels (lane-dense).
    y1 = jnp.dot(p1_ref[...], w1m_ref[...], preferred_element_type=jnp.float32)
    y1 = y1 + b1_ref[...]
    y1 = jnp.where(y1 > 0, y1, LEAKY_SLOPE * y1)                  # (N*OH1*OW1, 128)

    # --- Conv2d(64, 128, k=4, s=2, p=1) -------------------------------------
    # In-kernel im2col: for each of the 16 taps, g_ref[t] is a constant 0/1
    # matrix that gathers (via the MXU) the shifted rows of y1 this tap needs;
    # all-zero rows implement the spatial zero padding.  w2t_ref[t] is that
    # tap's (C_in_padded, C_out) weight slice (padded input rows are zero).
    n_taps, rows2, _ = g_ref.shape
    cout2 = w2t_ref.shape[2]
    acc = jnp.zeros((rows2, cout2), jnp.float32)
    for t in range(n_taps):                                       # static unroll (16)
        gathered = jnp.dot(g_ref[t], y1, preferred_element_type=jnp.float32)
        acc = acc + jnp.dot(gathered, w2t_ref[t],
                            preferred_element_type=jnp.float32)

    # --- BatchNorm2d(128), training statistics, + LeakyReLU(0.2) ------------
    # conv2's bias is omitted: it is exactly cancelled by the mean subtraction.
    mean = jnp.mean(acc, axis=0, keepdims=True)
    var = jnp.mean((acc - mean) ** 2, axis=0, keepdims=True)
    y2 = (acc - mean) * jax.lax.rsqrt(var + BN_EPS)
    y2 = y2 * gamma_ref[...] + beta_ref[...]
    y2 = jnp.where(y2 > 0, y2, LEAKY_SLOPE * y2)                  # (N*OH2*OW2, 128)

    # --- Conv2d(128, 1, k=4, s=1, p=1) + Flatten + Linear + Sigmoid ----------
    # Folded into a single weighted reduction: wf[r, c] is the precomputed
    # effective weight of activation (row r, channel c) on the logit (conv3
    # and the linear head are both linear, so their composition lives in the
    # weights); sel is a 0/1 per-sample row-sum selector; c0 = bl + b3*sum(wl).
    z = y2 * wf_ref[...]                                          # (N*OH2*OW2, 128)
    per_sample = jnp.dot(sel_ref[...], z,
                         preferred_element_type=jnp.float32)      # (N, 128)
    logits = jnp.sum(per_sample, axis=-1, keepdims=True) + c0_ref[0]
    out_ref[...] = (1.0 / (1.0 + jnp.exp(-logits))).astype(out_ref.dtype)


# ---------------------------------------------------------------------------
# JAX-side glue (all under jit)
# ---------------------------------------------------------------------------
def im2col(x_nhwc, kh, kw, stride, pad):
    x = jnp.pad(x_nhwc, ((0, 0), (pad, pad), (pad, pad), (0, 0)))
    n, hp, wp, c = x.shape
    oh = (hp - kh) // stride + 1
    ow = (wp - kw) // stride + 1
    cols = []
    for i in range(kh):
        for j in range(kw):
            cols.append(
                x[:, i: i + stride * oh: stride, j: j + stride * ow: stride, :])
    p = jnp.stack(cols, axis=3)                  # [N, OH, OW, KH*KW, C]
    return p.reshape(n * oh * ow, kh * kw * c), oh, ow


def conv_weight_to_matmul(w_oihw):
    """[C_out, C_in, KH, KW] -> [KH*KW*C_in, C_out] (matches im2col order)."""
    co, ci, kh, kw = w_oihw.shape
    return jnp.transpose(w_oihw, (2, 3, 1, 0)).reshape(kh * kw * ci, co)


def discriminator_forward(x_nchw, prep):
    """x_nchw: (N, 1, H, W).  prep: dict from prepare_operands()."""
    n = x_nchw.shape[0]
    x = jnp.transpose(x_nchw, (0, 2, 3, 1))      # NHWC
    p1, _, _ = im2col(x, 4, 4, 2, 1)             # (N*OH1*OW1, 16)

    vmem = pl.BlockSpec(memory_space=pltpu.MemorySpace.VMEM)
    smem = pl.BlockSpec(memory_space=pltpu.MemorySpace.SMEM)
    return pl.pallas_call(
        _disc_kernel,
        out_shape=jax.ShapeDtypeStruct((n, 1), jnp.float32),
        in_specs=[smem] + [vmem] * 9,
        out_specs=vmem,
    )(prep["c0"], p1, prep["w1m"], prep["b1"], prep["G"], prep["w2t"],
      prep["gamma"], prep["beta"], prep["wf"], prep["sel"])


# ---------------------------------------------------------------------------
# One-time weight preprocessing (outside jit; depends only on params/shapes)
# ---------------------------------------------------------------------------
def prepare_operands(params, n, input_h, input_w):
    kh = kw = 4
    oh1, ow1 = input_h // 2, input_w // 2        # conv1: k4 s2 p1
    oh2, ow2 = oh1 // 2, ow1 // 2                # conv2: k4 s2 p1
    oh3, ow3 = oh2 - 1, ow2 - 1                  # conv3: k4 s1 p1

    # conv1: [16, 64] -> pad out-channels to 128 for a lane-dense activation.
    w1m = conv_weight_to_matmul(params["w1"])                       # (16, 64)
    w1m = jnp.pad(w1m, ((0, 0), (0, LANES - w1m.shape[1])))
    b1 = jnp.pad(params["b1"], (0, LANES - params["b1"].shape[0])).reshape(1, LANES)

    # conv2 per-tap weights: (16, C_in padded to 128, C_out=128).
    co2, ci2, _, _ = params["w2"].shape
    w2t = jnp.transpose(params["w2"], (2, 3, 1, 0)).reshape(kh * kw, ci2, co2)
    w2t = jnp.pad(w2t, ((0, 0), (0, LANES - ci2), (0, 0)))

    # Constant 0/1 gather matrices implementing conv2's im2col in-kernel.
    rows1, rows2 = n * oh1 * ow1, n * oh2 * ow2
    G = np.zeros((kh * kw, rows2, rows1), np.float32)
    for b in range(n):
        for oh in range(oh2):
            for ow in range(ow2):
                r2 = (b * oh2 + oh) * ow2 + ow
                for ki in range(kh):
                    for kj in range(kw):
                        h = oh * 2 + ki - 1
                        w = ow * 2 + kj - 1
                        if 0 <= h < oh1 and 0 <= w < ow1:
                            G[ki * kw + kj, r2, (b * oh1 + h) * ow1 + w] = 1.0

    # Fold conv3 (1 out channel) + Flatten + Linear into an effective weight
    # on the conv2 activation:  logit = c0 + sum_{r,c} act2[r, c] * wf[r, c].
    w3 = np.asarray(params["w3"])                                   # (1,128,4,4)
    wl = np.asarray(params["wl"])                                   # (oh3*ow3, 1)
    wf_sp = np.zeros((oh2, ow2, co2), np.float32)
    for a in range(oh3):
        for b in range(ow3):
            coeff = wl[a * ow3 + b, 0]
            for ki in range(kh):
                for kj in range(kw):
                    h2, w2_ = a + ki - 1, b + kj - 1
                    if 0 <= h2 < oh2 and 0 <= w2_ < ow2:
                        wf_sp[h2, w2_, :] += coeff * w3[0, :, ki, kj]
    wf = np.tile(wf_sp.reshape(oh2 * ow2, co2), (n, 1))             # (rows2, 128)

    # Per-sample row-sum selector and the scalar constant (SMEM).
    sel = np.zeros((n, rows2), np.float32)
    for b in range(n):
        sel[b, b * oh2 * ow2:(b + 1) * oh2 * ow2] = 1.0
    c0 = np.float32(np.asarray(params["bl"])[0]
                    + np.asarray(params["b3"])[0] * wl.sum())

    return dict(
        c0=jnp.asarray([c0], dtype=jnp.float32),
        w1m=w1m, b1=b1, G=jnp.asarray(G), w2t=w2t,
        gamma=params["bn_gamma"].reshape(1, co2),
        beta=params["bn_beta"].reshape(1, co2),
        wf=jnp.asarray(wf), sel=jnp.asarray(sel))


# ---------------------------------------------------------------------------
# Pure-JAX reference (NCHW) to sanity-check the Pallas path
# ---------------------------------------------------------------------------
def reference_forward(x_nchw, params):
    def conv(x, w, b, stride, pad):
        y = jax.lax.conv_general_dilated(
            x, w, (stride, stride), [(pad, pad), (pad, pad)],
            dimension_numbers=("NCHW", "OIHW", "NCHW"))
        return y + b.reshape(1, -1, 1, 1)

    y = conv(x_nchw, params["w1"], params["b1"], 2, 1)
    y = jnp.where(y > 0, y, LEAKY_SLOPE * y)
    y = conv(y, params["w2"], params["b2"], 2, 1)
    mean = jnp.mean(y, axis=(0, 2, 3), keepdims=True)
    var = jnp.mean((y - mean) ** 2, axis=(0, 2, 3), keepdims=True)
    y = (y - mean) / jnp.sqrt(var + BN_EPS)
    y = y * params["bn_gamma"].reshape(1, -1, 1, 1) + params["bn_beta"].reshape(1, -1, 1, 1)
    y = jnp.where(y > 0, y, LEAKY_SLOPE * y)
    y = conv(y, params["w3"], params["b3"], 1, 1)
    flat = y.reshape(y.shape[0], -1)
    logits = flat @ params["wl"] + params["bl"]
    return 1.0 / (1.0 + jnp.exp(-logits))


def make_params(key, input_h, input_w):
    ks = jax.random.split(key, 8)
    w1 = jax.random.normal(ks[0], (64, 1, 4, 4), jnp.float32) * 0.1
    b1 = jax.random.normal(ks[1], (64,), jnp.float32) * 0.05
    w2 = jax.random.normal(ks[2], (128, 64, 4, 4), jnp.float32) * 0.05
    b2 = jax.random.normal(ks[3], (128,), jnp.float32) * 0.05
    w3 = jax.random.normal(ks[4], (1, 128, 4, 4), jnp.float32) * 0.05
    b3 = jax.random.normal(ks[5], (1,), jnp.float32) * 0.05
    oh = ((input_h // 2) // 2) - 1
    ow = ((input_w // 2) // 2) - 1
    wl = jax.random.normal(ks[6], (oh * ow, 1), jnp.float32) * 0.1
    bl = jax.random.normal(ks[7], (1,), jnp.float32) * 0.05
    return dict(w1=w1, b1=b1, w2=w2, b2=b2, w3=w3, b3=b3, wl=wl, bl=bl,
                bn_gamma=jnp.ones((128,), jnp.float32),   # BatchNorm2d defaults
                bn_beta=jnp.zeros((128,), jnp.float32))


if __name__ == "__main__":
    H = W = 16
    N = 2
    key = jax.random.PRNGKey(0)
    pkey, xkey = jax.random.split(key)
    params = make_params(pkey, H, W)
    x = jax.random.normal(xkey, (N, 1, H, W), jnp.float32)   # NCHW, 1 channel

    prep = prepare_operands(params, N, H, W)
    forward = jax.jit(discriminator_forward)
    out = jax.block_until_ready(forward(x, prep))

    ref = jax.block_until_ready(reference_forward(x, params))
    assert out.shape == (N, 1), out.shape
    assert jnp.allclose(out, ref, atol=1e-4, rtol=1e-4), (out, ref)

    print("KERNEL_OK")
</pallas_src>

<mosaic_0001>
module attributes {stable_mosaic.version = 11 : i64} {
  func.func @_disc_kernel(%arg0: memref<1xf32, #tpu.memory_space<smem>>, %arg1: memref<128x16xf32, #tpu.memory_space<vmem>>, %arg2: memref<16x128xf32, #tpu.memory_space<vmem>>, %arg3: memref<1x128xf32, #tpu.memory_space<vmem>>, %arg4: memref<16x32x128xf32, #tpu.memory_space<vmem>>, %arg5: memref<16x128x128xf32, #tpu.memory_space<vmem>>, %arg6: memref<1x128xf32, #tpu.memory_space<vmem>>, %arg7: memref<1x128xf32, #tpu.memory_space<vmem>>, %arg8: memref<32x128xf32, #tpu.memory_space<vmem>>, %arg9: memref<2x32xf32, #tpu.memory_space<vmem>>, %arg10: memref<2x1xf32, #tpu.memory_space<vmem>>) attributes {dimension_semantics = [], scalar_prefetch = 0 : i64, scratch_operands = 0 : i64, tpu.core_type = #tpu.core_type<tc>} {
    %c0 = arith.constant 0 : index
    %c0_0 = arith.constant 0 : index
    %0 = vector.load %arg1[%c0, %c0_0] : memref<128x16xf32, #tpu.memory_space<vmem>>, vector<128x16xf32>
    %c0_1 = arith.constant 0 : index
    %c0_2 = arith.constant 0 : index
    %1 = vector.load %arg2[%c0_1, %c0_2] : memref<16x128xf32, #tpu.memory_space<vmem>>, vector<16x128xf32>
    %cst = arith.constant dense<0.000000e+00> : vector<128x128xf32>
    %2 = tpu.matmul %0, %1, %cst {dimension_numbers = #tpu.dot_dimension_numbers<[1], [0], [0], [1], [0, 0, 1, 1], [], []>} : vector<128x16xf32>, vector<16x128xf32>, vector<128x128xf32> -> vector<128x128xf32>
    %c0_3 = arith.constant 0 : index
    %c0_4 = arith.constant 0 : index
    %3 = vector.load %arg3[%c0_3, %c0_4] : memref<1x128xf32, #tpu.memory_space<vmem>>, vector<1x128xf32>
    %4 = vector.broadcast %3 : vector<1x128xf32> to vector<128x128xf32>
    %5 = arith.addf %2, %4 : vector<128x128xf32>
    %cst_5 = arith.constant 0.000000e+00 : f32
    %6 = vector.broadcast %cst_5 : f32 to vector<128x128xf32>
    %7 = arith.cmpf ogt, %5, %6 : vector<128x128xf32>
    %cst_6 = arith.constant 2.000000e-01 : f32
    %8 = vector.broadcast %cst_6 : f32 to vector<128x128xf32>
    %9 = arith.mulf %8, %5 : vector<128x128xf32>
    %10 = arith.select %7, %5, %9 : vector<128x128xi1>, vector<128x128xf32>
    %cst_7 = arith.constant 0.000000e+00 : f32
    %11 = vector.broadcast %cst_7 : f32 to vector<32x128xf32>
    %c0_8 = arith.constant 0 : index
    %c0_9 = arith.constant 0 : index
    %c0_10 = arith.constant 0 : index
    %12 = vector.load %arg4[%c0_8, %c0_9, %c0_10] : memref<16x32x128xf32, #tpu.memory_space<vmem>>, vector<1x32x128xf32>
    %13 = vector.shape_cast %12 : vector<1x32x128xf32> to vector<32x128xf32>
    %cst_11 = arith.constant dense<0.000000e+00> : vector<32x128xf32>
    %14 = tpu.matmul %13, %10, %cst_11 {dimension_numbers = #tpu.dot_dimension_numbers<[1], [0], [0], [1], [0, 0, 1, 1], [], []>} : vector<32x128xf32>, vector<128x128xf32>, vector<32x128xf32> -> vector<32x128xf32>
    %c0_12 = arith.constant 0 : index
    %c0_13 = arith.constant 0 : index
    %c0_14 = arith.constant 0 : index
    %15 = vector.load %arg5[%c0_12, %c0_13, %c0_14] : memref<16x128x128xf32, #tpu.memory_space<vmem>>, vector<1x128x128xf32>
    %16 = vector.shape_cast %15 : vector<1x128x128xf32> to vector<128x128xf32>
    %cst_15 = arith.constant dense<0.000000e+00> : vector<32x128xf32>
    %17 = tpu.matmul %14, %16, %cst_15 {dimension_numbers = #tpu.dot_dimension_numbers<[1], [0], [0], [1], [0, 0, 1, 1], [], []>} : vector<32x128xf32>, vector<128x128xf32>, vector<32x128xf32> -> vector<32x128xf32>
    %18 = arith.addf %11, %17 : vector<32x128xf32>
    %c1 = arith.constant 1 : index
    %c0_16 = arith.constant 0 : index
    %c0_17 = arith.constant 0 : index
    %19 = vector.load %arg4[%c1, %c0_16, %c0_17] : memref<16x32x128xf32, #tpu.memory_space<vmem>>, vector<1x32x128xf32>
    %20 = vector.shape_cast %19 : vector<1x32x128xf32> to vector<32x128xf32>
    %cst_18 = arith.constant dense<0.000000e+00> : vector<32x128xf32>
    %21 = tpu.matmul %20, %10, %cst_18 {dimension_numbers = #tpu.dot_dimension_numbers<[1], [0], [0], [1], [0, 0, 1, 1], [], []>} : vector<32x128xf32>, vector<128x128xf32>, vector<32x128xf32> -> vector<32x128xf32>
    %c1_19 = arith.constant 1 : index
    %c0_20 = arith.constant 0 : index
    %c0_21 = arith.constant 0 : index
    %22 = vector.load %arg5[%c1_19, %c0_20, %c0_21] : memref<16x128x128xf32, #tpu.memory_space<vmem>>, vector<1x128x128xf32>
    %23 = vector.shape_cast %22 : vector<1x128x128xf32> to vector<128x128xf32>
    %cst_22 = arith.constant dense<0.000000e+00> : vector<32x128xf32>
    %24 = tpu.matmul %21, %23, %cst_22 {dimension_numbers = #tpu.dot_dimension_numbers<[1], [0], [0], [1], [0, 0, 1, 1], [], []>} : vector<32x128xf32>, vector<128x128xf32>, vector<32x128xf32> -> vector<32x128xf32>
    %25 = arith.addf %18, %24 : vector<32x128xf32>
    %c2 = arith.constant 2 : index
    %c0_23 = arith.constant 0 : index
    %c0_24 = arith.constant 0 : index
    %26 = vector.load %arg4[%c2, %c0_23, %c0_24] : memref<16x32x128xf32, #tpu.memory_space<vmem>>, vector<1x32x128xf32>
    %27 = vector.shape_cast %26 : vector<1x32x128xf32> to vector<32x128xf32>
    %cst_25 = arith.constant dense<0.000000e+00> : vector<32x128xf32>
    %28 = tpu.matmul %27, %10, %cst_25 {dimension_numbers = #tpu.dot_dimension_numbers<[1], [0], [0], [1], [0, 0, 1, 1], [], []>} : vector<32x128xf32>, vector<128x128xf32>, vector<32x128xf32> -> vector<32x128xf32>
    %c2_26 = arith.constant 2 : index
    %c0_27 = arith.constant 0 : index
    %c0_28 = arith.constant 0 : index
    %29 = vector.load %arg5[%c2_26, %c0_27, %c0_28] : memref<16x128x128xf32, #tpu.memory_space<vmem>>, vector<1x128x128xf32>
    %30 = vector.shape_cast %29 : vector<1x128x128xf32> to vector<128x128xf32>
    %cst_29 = arith.constant dense<0.000000e+00> : vector<32x128xf32>
    %31 = tpu.matmul %28, %30, %cst_29 {dimension_numbers = #tpu.dot_dimension_numbers<[1], [0], [0], [1], [0, 0, 1, 1], [], []>} : vector<32x128xf32>, vector<128x128xf32>, vector<32x128xf32> -> vector<32x128xf32>
    %32 = arith.addf %25, %31 : vector<32x128xf32>
    %c3 = arith.constant 3 : index
    %c0_30 = arith.constant 0 : index
    %c0_31 = arith.constant 0 : index
    %33 = vector.load %arg4[%c3, %c0_30, %c0_31] : memref<16x32x128xf32, #tpu.memory_space<vmem>>, vector<1x32x128xf32>
    %34 = vector.shape_cast %33 : vector<1x32x128xf32> to vector<32x128xf32>
    %cst_32 = arith.constant dense<0.000000e+00> : vector<32x128xf32>
    %35 = tpu.matmul %34, %10, %cst_32 {dimension_numbers = #tpu.dot_dimension_numbers<[1], [0], [0], [1], [0, 0, 1, 1], [], []>} : vector<32x128xf32>, vector<128x128xf32>, vector<32x128xf32> -> vector<32x128xf32>
    %c3_33 = arith.constant 3 : index
    %c0_34 = arith.constant 0 : index
    %c0_35 = arith.constant 0 : index
    %36 = vector.load %arg5[%c3_33, %c0_34, %c0_35] : memref<16x128x128xf32, #tpu.memory_space<vmem>>, vector<1x128x128xf32>
    %37 = vector.shape_cast %36 : vector<1x128x128xf32> to vector<128x128xf32>
    %cst_36 = arith.constant dense<0.000000e+00> : vector<32x128xf32>
    %38 = tpu.matmul %35, %37, %cst_36 {dimension_numbers = #tpu.dot_dimension_numbers<[1], [0], [0], [1], [0, 0, 1, 1], [], []>} : vector<32x128xf32>, vector<128x128xf32>, vector<32x128xf32> -> vector<32x128xf32>
    %39 = arith.addf %32, %38 : vector<32x128xf32>
    %c4 = arith.constant 4 : index
    %c0_37 = arith.constant 0 : index
    %c0_38 = arith.constant 0 : index
    %40 = vector.load %arg4[%c4, %c0_37, %c0_38] : memref<16x32x128xf32, #tpu.memory_space<vmem>>, vector<1x32x128xf32>
    %41 = vector.shape_cast %40 : vector<1x32x128xf32> to vector<32x128xf32>
    %cst_39 = arith.constant dense<0.000000e+00> : vector<32x128xf32>
    %42 = tpu.matmul %41, %10, %cst_39 {dimension_numbers = #tpu.dot_dimension_numbers<[1], [0], [0], [1], [0, 0, 1, 1], [], []>} : vector<32x128xf32>, vector<128x128xf32>, vector<32x128xf32> -> vector<32x128xf32>
    %c4_40 = arith.constant 4 : index
    %c0_41 = arith.constant 0 : index
    %c0_42 = arith.constant 0 : index
    %43 = vector.load %arg5[%c4_40, %c0_41, %c0_42] : memref<16x128x128xf32, #tpu.memory_space<vmem>>, vector<1x128x128xf32>
    %44 = vector.shape_cast %43 : vector<1x128x128xf32> to vector<128x128xf32>
    %cst_43 = arith.constant dense<0.000000e+00> : vector<32x128xf32>
    %45 = tpu.matmul %42, %44, %cst_43 {dimension_numbers = #tpu.dot_dimension_numbers<[1], [0], [0], [1], [0, 0, 1, 1], [], []>} : vector<32x128xf32>, vector<128x128xf32>, vector<32x128xf32> -> vector<32x128xf32>
    %46 = arith.addf %39, %45 : vector<32x128xf32>
    %c5 = arith.constant 5 : index
    %c0_44 = arith.constant 0 : index
    %c0_45 = arith.constant 0 : index
    %47 = vector.load %arg4[%c5, %c0_44, %c0_45] : memref<16x32x128xf32, #tpu.memory_space<vmem>>, vector<1x32x128xf32>
    %48 = vector.shape_cast %47 : vector<1x32x128xf32> to vector<32x128xf32>
    %cst_46 = arith.constant dense<0.000000e+00> : vector<32x128xf32>
    %49 = tpu.matmul %48, %10, %cst_46 {dimension_numbers = #tpu.dot_dimension_numbers<[1], [0], [0], [1], [0, 0, 1, 1], [], []>} : vector<32x128xf32>, vector<128x128xf32>, vector<32x128xf32> -> vector<32x128xf32>
    %c5_47 = arith.constant 5 : index
    %c0_48 = arith.constant 0 : index
    %c0_49 = arith.constant 0 : index
    %50 = vector.load %arg5[%c5_47, %c0_48, %c0_49] : memref<16x128x128xf32, #tpu.memory_space<vmem>>, vector<1x128x128xf32>
    %51 = vector.shape_cast %50 : vector<1x128x128xf32> to vector<128x128xf32>
    %cst_50 = arith.constant dense<0.000000e+00> : vector<32x128xf32>
    %52 = tpu.matmul %49, %51, %cst_50 {dimension_numbers = #tpu.dot_dimension_numbers<[1], [0], [0], [1], [0, 0, 1, 1], [], []>} : vector<32x128xf32>, vector<128x128xf32>, vector<32x128xf32> -> vector<32x128xf32>
    %53 = arith.addf %46, %52 : vector<32x128xf32>
    %c6 = arith.constant 6 : index
    %c0_51 = arith.constant 0 : index
    %c0_52 = arith.constant 0 : index
    %54 = vector.load %arg4[%c6, %c0_51, %c0_52] : memref<16x32x128xf32, #tpu.memory_space<vmem>>, vector<1x32x128xf32>
    %55 = vector.shape_cast %54 : vector<1x32x128xf32> to vector<32x128xf32>
    %cst_53 = arith.constant dense<0.000000e+00> : vector<32x128xf32>
    %56 = tpu.matmul %55, %10, %cst_53 {dimension_numbers = #tpu.dot_dimension_numbers<[1], [0], [0], [1], [0, 0, 1, 1], [], []>} : vector<32x128xf32>, vector<128x128xf32>, vector<32x128xf32> -> vector<32x128xf32>
    %c6_54 = arith.constant 6 : index
    %c0_55 = arith.constant 0 : index
    %c0_56 = arith.constant 0 : index
    %57 = vector.load %arg5[%c6_54, %c0_55, %c0_56] : memref<16x128x128xf32, #tpu.memory_space<vmem>>, vector<1x128x128xf32>
    %58 = vector.shape_cast %57 : vector<1x128x128xf32> to vector<128x128xf32>
    %cst_57 = arith.constant dense<0.000000e+00> : vector<32x128xf32>
    %59 = tpu.matmul %56, %58, %cst_57 {dimension_numbers = #tpu.dot_dimension_numbers<[1], [0], [0], [1], [0, 0, 1, 1], [], []>} : vector<32x128xf32>, vector<128x128xf32>, vector<32x128xf32> -> vector<32x128xf32>
    %60 = arith.addf %53, %59 : vector<32x128xf32>
    %c7 = arith.constant 7 : index
    %c0_58 = arith.constant 0 : index
    %c0_59 = arith.constant 0 : index
    %61 = vector.load %arg4[%c7, %c0_58, %c0_59] : memref<16x32x128xf32, #tpu.memory_space<vmem>>, vector<1x32x128xf32>
    %62 = vector.shape_cast %61 : vector<1x32x128xf32> to vector<32x128xf32>
    %cst_60 = arith.constant dense<0.000000e+00> : vector<32x128xf32>
    %63 = tpu.matmul %62, %10, %cst_60 {dimension_numbers = #tpu.dot_dimension_numbers<[1], [0], [0], [1], [0, 0, 1, 1], [], []>} : vector<32x128xf32>, vector<128x128xf32>, vector<32x128xf32> -> vector<32x128xf32>
    %c7_61 = arith.constant 7 : index
    %c0_62 = arith.constant 0 : index
    %c0_63 = arith.constant 0 : index
    %64 = vector.load %arg5[%c7_61, %c0_62, %c0_63] : memref<16x128x128xf32, #tpu.memory_space<vmem>>, vector<1x128x128xf32>
    %65 = vector.shape_cast %64 : vector<1x128x128xf32> to vector<128x128xf32>
    %cst_64 = arith.constant dense<0.000000e+00> : vector<32x128xf32>
    %66 = tpu.matmul %63, %65, %cst_64 {dimension_numbers = #tpu.dot_dimension_numbers<[1], [0], [0], [1], [0, 0, 1, 1], [], []>} : vector<32x128xf32>, vector<128x128xf32>, vector<32x128xf32> -> vector<32x128xf32>
    %67 = arith.addf %60, %66 : vector<32x128xf32>
    %c8 = arith.constant 8 : index
    %c0_65 = arith.constant 0 : index
    %c0_66 = arith.constant 0 : index
    %68 = vector.load %arg4[%c8, %c0_65, %c0_66] : memref<16x32x128xf32, #tpu.memory_space<vmem>>, vector<1x32x128xf32>
    %69 = vector.shape_cast %68 : vector<1x32x128xf32> to vector<32x128xf32>
    %cst_67 = arith.constant dense<0.000000e+00> : vector<32x128xf32>
    %70 = tpu.matmul %69, %10, %cst_67 {dimension_numbers = #tpu.dot_dimension_numbers<[1], [0], [0], [1], [0, 0, 1, 1], [], []>} : vector<32x128xf32>, vector<128x128xf32>, vector<32x128xf32> -> vector<32x128xf32>
    %c8_68 = arith.constant 8 : index
    %c0_69 = arith.constant 0 : index
    %c0_70 = arith.constant 0 : index
    %71 = vector.load %arg5[%c8_68, %c0_69, %c0_70] : memref<16x128x128xf32, #tpu.memory_space<vmem>>, vector<1x128x128xf32>
    %72 = vector.shape_cast %71 : vector<1x128x128xf32> to vector<128x128xf32>
    %cst_71 = arith.constant dense<0.000000e+00> : vector<32x128xf32>
    %73 = tpu.matmul %70, %72, %cst_71 {dimension_numbers = #tpu.dot_dimension_numbers<[1], [0], [0], [1], [0, 0, 1, 1], [], []>} : vector<32x128xf32>, vector<128x128xf32>, vector<32x128xf32> -> vector<32x128xf32>
    %74 = arith.addf %67, %73 : vector<32x128xf32>
    %c9 = arith.constant 9 : index
    %c0_72 = arith.constant 0 : index
    %c0_73 = arith.constant 0 : index
    %75 = vector.load %arg4[%c9, %c0_72, %c0_73] : memref<16x32x128xf32, #tpu.memory_space<vmem>>, vector<1x32x128xf32>
    %76 = vector.shape_cast %75 : vector<1x32x128xf32> to vector<32x128xf32>
    %cst_74 = arith.constant dense<0.000000e+00> : vector<32x128xf32>
    %77 = tpu.matmul %76, %10, %cst_74 {dimension_numbers = #tpu.dot_dimension_numbers<[1], [0], [0], [1], [0, 0, 1, 1], [], []>} : vector<32x128xf32>, vector<128x128xf32>, vector<32x128xf32> -> vector<32x128xf32>
    %c9_75 = arith.constant 9 : index
    %c0_76 = arith.constant 0 : index
    %c0_77 = arith.constant 0 : index
    %78 = vector.load %arg5[%c9_75, %c0_76, %c0_77] : memref<16x128x128xf32, #tpu.memory_space<vmem>>, vector<1x128x128xf32>
    %79 = vector.shape_cast %78 : vector<1x128x128xf32> to vector<128x128xf32>
    %cst_78 = arith.constant dense<0.000000e+00> : vector<32x128xf32>
    %80 = tpu.matmul %77, %79, %cst_78 {dimension_numbers = #tpu.dot_dimension_numbers<[1], [0], [0], [1], [0, 0, 1, 1], [], []>} : vector<32x128xf32>, vector<128x128xf32>, vector<32x128xf32> -> vector<32x128xf32>
    %81 = arith.addf %74, %80 : vector<32x128xf32>
    %c10 = arith.constant 10 : index
    %c0_79 = arith.constant 0 : index
    %c0_80 = arith.constant 0 : index
    %82 = vector.load %arg4[%c10, %c0_79, %c0_80] : memref<16x32x128xf32, #tpu.memory_space<vmem>>, vector<1x32x128xf32>
    %83 = vector.shape_cast %82 : vector<1x32x128xf32> to vector<32x128xf32>
    %cst_81 = arith.constant dense<0.000000e+00> : vector<32x128xf32>
    %84 = tpu.matmul %83, %10, %cst_81 {dimension_numbers = #tpu.dot_dimension_numbers<[1], [0], [0], [1], [0, 0, 1, 1], [], []>} : vector<32x128xf32>, vector<128x128xf32>, vector<32x128xf32> -> vector<32x128xf32>
    %c10_82 = arith.constant 10 : index
    %c0_83 = arith.constant 0 : index
    %c0_84 = arith.constant 0 : index
    %85 = vector.load %arg5[%c10_82, %c0_83, %c0_84] : memref<16x128x128xf32, #tpu.memory_space<vmem>>, vector<1x128x128xf32>
    %86 = vector.shape_cast %85 : vector<1x128x128xf32> to vector<128x128xf32>
    %cst_85 = arith.constant dense<0.000000e+00> : vector<32x128xf32>
    %87 = tpu.matmul %84, %86, %cst_85 {dimension_numbers = #tpu.dot_dimension_numbers<[1], [0], [0], [1], [0, 0, 1, 1], [], []>} : vector<32x128xf32>, vector<128x128xf32>, vector<32x128xf32> -> vector<32x128xf32>
    %88 = arith.addf %81, %87 : vector<32x128xf32>
    %c11 = arith.constant 11 : index
    %c0_86 = arith.constant 0 : index
    %c0_87 = arith.constant 0 : index
    %89 = vector.load %arg4[%c11, %c0_86, %c0_87] : memref<16x32x128xf32, #tpu.memory_space<vmem>>, vector<1x32x128xf32>
    %90 = vector.shape_cast %89 : vector<1x32x128xf32> to vector<32x128xf32>
    %cst_88 = arith.constant dense<0.000000e+00> : vector<32x128xf32>
    %91 = tpu.matmul %90, %10, %cst_88 {dimension_numbers = #tpu.dot_dimension_numbers<[1], [0], [0], [1], [0, 0, 1, 1], [], []>} : vector<32x128xf32>, vector<128x128xf32>, vector<32x128xf32> -> vector<32x128xf32>
    %c11_89 = arith.constant 11 : index
    %c0_90 = arith.constant 0 : index
    %c0_91 = arith.constant 0 : index
    %92 = vector.load %arg5[%c11_89, %c0_90, %c0_91] : memref<16x128x128xf32, #tpu.memory_space<vmem>>, vector<1x128x128xf32>
    %93 = vector.shape_cast %92 : vector<1x128x128xf32> to vector<128x128xf32>
    %cst_92 = arith.constant dense<0.000000e+00> : vector<32x128xf32>
    %94 = tpu.matmul %91, %93, %cst_92 {dimension_numbers = #tpu.dot_dimension_numbers<[1], [0], [0], [1], [0, 0, 1, 1], [], []>} : vector<32x128xf32>, vector<128x128xf32>, vector<32x128xf32> -> vector<32x128xf32>
    %95 = arith.addf %88, %94 : vector<32x128xf32>
    %c12 = arith.constant 12 : index
    %c0_93 = arith.constant 0 : index
    %c0_94 = arith.constant 0 : index
    %96 = vector.load %arg4[%c12, %c0_93, %c0_94] : memref<16x32x128xf32, #tpu.memory_space<vmem>>, vector<1x32x128xf32>
    %97 = vector.shape_cast %96 : vector<1x32x128xf32> to vector<32x128xf32>
    %cst_95 = arith.constant dense<0.000000e+00> : vector<32x128xf32>
    %98 = tpu.matmul %97, %10, %cst_95 {dimension_numbers = #tpu.dot_dimension_numbers<[1], [0], [0], [1], [0, 0, 1, 1], [], []>} : vector<32x128xf32>, vector<128x128xf32>, vector<32x128xf32> -> vector<32x128xf32>
    %c12_96 = arith.constant 12 : index
    %c0_97 = arith.constant 0 : index
    %c0_98 = arith.constant 0 : index
    %99 = vector.load %arg5[%c12_96, %c0_97, %c0_98] : memref<16x128x128xf32, #tpu.memory_space<vmem>>, vector<1x128x128xf32>
    %100 = vector.shape_cast %99 : vector<1x128x128xf32> to vector<128x128xf32>
    %cst_99 = arith.constant dense<0.000000e+00> : vector<32x128xf32>
    %101 = tpu.matmul %98, %100, %cst_99 {dimension_numbers = #tpu.dot_dimension_numbers<[1], [0], [0], [1], [0, 0, 1, 1], [], []>} : vector<32x128xf32>, vector<128x128xf32>, vector<32x128xf32> -> vector<32x128xf32>
    %102 = arith.addf %95, %101 : vector<32x128xf32>
    %c13 = arith.constant 13 : index
    %c0_100 = arith.constant 0 : index
    %c0_101 = arith.constant 0 : index
    %103 = vector.load %arg4[%c13, %c0_100, %c0_101] : memref<16x32x128xf32, #tpu.memory_space<vmem>>, vector<1x32x128xf32>
    %104 = vector.shape_cast %103 : vector<1x32x128xf32> to vector<32x128xf32>
    %cst_102 = arith.constant dense<0.000000e+00> : vector<32x128xf32>
    %105 = tpu.matmul %104, %10, %cst_102 {dimension_numbers = #tpu.dot_dimension_numbers<[1], [0], [0], [1], [0, 0, 1, 1], [], []>} : vector<32x128xf32>, vector<128x128xf32>, vector<32x128xf32> -> vector<32x128xf32>
    %c13_103 = arith.constant 13 : index
    %c0_104 = arith.constant 0 : index
    %c0_105 = arith.constant 0 : index
    %106 = vector.load %arg5[%c13_103, %c0_104, %c0_105] : memref<16x128x128xf32, #tpu.memory_space<vmem>>, vector<1x128x128xf32>
    %107 = vector.shape_cast %106 : vector<1x128x128xf32> to vector<128x128xf32>
    %cst_106 = arith.constant dense<0.000000e+00> : vector<32x128xf32>
    %108 = tpu.matmul %105, %107, %cst_106 {dimension_numbers = #tpu.dot_dimension_numbers<[1], [0], [0], [1], [0, 0, 1, 1], [], []>} : vector<32x128xf32>, vector<128x128xf32>, vector<32x128xf32> -> vector<32x128xf32>
    %109 = arith.addf %102, %108 : vector<32x128xf32>
    %c14 = arith.constant 14 : index
    %c0_107 = arith.constant 0 : index
    %c0_108 = arith.constant 0 : index
    %110 = vector.load %arg4[%c14, %c0_107, %c0_108] : memref<16x32x128xf32, #tpu.memory_space<vmem>>, vector<1x32x128xf32>
    %111 = vector.shape_cast %110 : vector<1x32x128xf32> to vector<32x128xf32>
    %cst_109 = arith.constant dense<0.000000e+00> : vector<32x128xf32>
    %112 = tpu.matmul %111, %10, %cst_109 {dimension_numbers = #tpu.dot_dimension_numbers<[1], [0], [0], [1], [0, 0, 1, 1], [], []>} : vector<32x128xf32>, vector<128x128xf32>, vector<32x128xf32> -> vector<32x128xf32>
    %c14_110 = arith.constant 14 : index
    %c0_111 = arith.constant 0 : index
    %c0_112 = arith.constant 0 : index
    %113 = vector.load %arg5[%c14_110, %c0_111, %c0_112] : memref<16x128x128xf32, #tpu.memory_space<vmem>>, vector<1x128x128xf32>
    %114 = vector.shape_cast %113 : vector<1x128x128xf32> to vector<128x128xf32>
    %cst_113 = arith.constant dense<0.000000e+00> : vector<32x128xf32>
    %115 = tpu.matmul %112, %114, %cst_113 {dimension_numbers = #tpu.dot_dimension_numbers<[1], [0], [0], [1], [0, 0, 1, 1], [], []>} : vector<32x128xf32>, vector<128x128xf32>, vector<32x128xf32> -> vector<32x128xf32>
    %116 = arith.addf %109, %115 : vector<32x128xf32>
    %c15 = arith.constant 15 : index
    %c0_114 = arith.constant 0 : index
    %c0_115 = arith.constant 0 : index
    %117 = vector.load %arg4[%c15, %c0_114, %c0_115] : memref<16x32x128xf32, #tpu.memory_space<vmem>>, vector<1x32x128xf32>
    %118 = vector.shape_cast %117 : vector<1x32x128xf32> to vector<32x128xf32>
    %cst_116 = arith.constant dense<0.000000e+00> : vector<32x128xf32>
    %119 = tpu.matmul %118, %10, %cst_116 {dimension_numbers = #tpu.dot_dimension_numbers<[1], [0], [0], [1], [0, 0, 1, 1], [], []>} : vector<32x128xf32>, vector<128x128xf32>, vector<32x128xf32> -> vector<32x128xf32>
    %c15_117 = arith.constant 15 : index
    %c0_118 = arith.constant 0 : index
    %c0_119 = arith.constant 0 : index
    %120 = vector.load %arg5[%c15_117, %c0_118, %c0_119] : memref<16x128x128xf32, #tpu.memory_space<vmem>>, vector<1x128x128xf32>
    %121 = vector.shape_cast %120 : vector<1x128x128xf32> to vector<128x128xf32>
    %cst_120 = arith.constant dense<0.000000e+00> : vector<32x128xf32>
    %122 = tpu.matmul %119, %121, %cst_120 {dimension_numbers = #tpu.dot_dimension_numbers<[1], [0], [0], [1], [0, 0, 1, 1], [], []>} : vector<32x128xf32>, vector<128x128xf32>, vector<32x128xf32> -> vector<32x128xf32>
    %123 = arith.addf %116, %122 : vector<32x128xf32>
    %cst_121 = arith.constant dense<0.000000e+00> : vector<128xf32>
    %124 = vector.multi_reduction <add>, %123, %cst_121 [0] : vector<32x128xf32> to vector<128xf32>
    %125 = vector.shape_cast %124 : vector<128xf32> to vector<1x128xf32>
    %cst_122 = arith.constant 3.200000e+01 : f32
    %126 = vector.broadcast %cst_122 : f32 to vector<1x128xf32>
    %127 = arith.divf %125, %126 : vector<1x128xf32>
    %128 = vector.broadcast %127 : vector<1x128xf32> to vector<32x128xf32>
    %129 = arith.subf %123, %128 : vector<32x128xf32>
    %130 = arith.mulf %129, %129 : vector<32x128xf32>
    %cst_123 = arith.constant dense<0.000000e+00> : vector<128xf32>
    %131 = vector.multi_reduction <add>, %130, %cst_123 [0] : vector<32x128xf32> to vector<128xf32>
    %132 = vector.shape_cast %131 : vector<128xf32> to vector<1x128xf32>
    %cst_124 = arith.constant 3.200000e+01 : f32
    %133 = vector.broadcast %cst_124 : f32 to vector<1x128xf32>
    %134 = arith.divf %132, %133 : vector<1x128xf32>
    %135 = vector.broadcast %127 : vector<1x128xf32> to vector<32x128xf32>
    %136 = arith.subf %123, %135 : vector<32x128xf32>
    %cst_125 = arith.constant 9.99999974E-6 : f32
    %137 = vector.broadcast %cst_125 : f32 to vector<1x128xf32>
    %138 = arith.addf %134, %137 : vector<1x128xf32>
    %139 = math.rsqrt %138 : vector<1x128xf32>
    %140 = vector.broadcast %139 : vector<1x128xf32> to vector<32x128xf32>
    %141 = arith.mulf %136, %140 : vector<32x128xf32>
    %c0_126 = arith.constant 0 : index
    %c0_127 = arith.constant 0 : index
    %142 = vector.load %arg6[%c0_126, %c0_127] : memref<1x128xf32, #tpu.memory_space<vmem>>, vector<1x128xf32>
    %143 = vector.broadcast %142 : vector<1x128xf32> to vector<32x128xf32>
    %144 = arith.mulf %141, %143 : vector<32x128xf32>
    %c0_128 = arith.constant 0 : index
    %c0_129 = arith.constant 0 : index
    %145 = vector.load %arg7[%c0_128, %c0_129] : memref<1x128xf32, #tpu.memory_space<vmem>>, vector<1x128xf32>
    %146 = vector.broadcast %145 : vector<1x128xf32> to vector<32x128xf32>
    %147 = arith.addf %144, %146 : vector<32x128xf32>
    %cst_130 = arith.constant 0.000000e+00 : f32
    %148 = vector.broadcast %cst_130 : f32 to vector<32x128xf32>
    %149 = arith.cmpf ogt, %147, %148 : vector<32x128xf32>
    %cst_131 = arith.constant 2.000000e-01 : f32
    %150 = vector.broadcast %cst_131 : f32 to vector<32x128xf32>
    %151 = arith.mulf %150, %147 : vector<32x128xf32>
    %152 = arith.select %149, %147, %151 : vector<32x128xi1>, vector<32x128xf32>
    %c0_132 = arith.constant 0 : index
    %c0_133 = arith.constant 0 : index
    %153 = vector.load %arg8[%c0_132, %c0_133] : memref<32x128xf32, #tpu.memory_space<vmem>>, vector<32x128xf32>
    %154 = arith.mulf %152, %153 : vector<32x128xf32>
    %c0_134 = arith.constant 0 : index
    %c0_135 = arith.constant 0 : index
    %155 = vector.load %arg9[%c0_134, %c0_135] : memref<2x32xf32, #tpu.memory_space<vmem>>, vector<2x32xf32>
    %cst_136 = arith.constant dense<0.000000e+00> : vector<2x128xf32>
    %156 = tpu.matmul %155, %154, %cst_136 {dimension_numbers = #tpu.dot_dimension_numbers<[1], [0], [0], [1], [0, 0, 1, 1], [], []>} : vector<2x32xf32>, vector<32x128xf32>, vector<2x128xf32> -> vector<2x128xf32>
    %cst_137 = arith.constant dense<0.000000e+00> : vector<2xf32>
    %157 = vector.multi_reduction <add>, %156, %cst_137 [1] : vector<2x128xf32> to vector<2xf32>
    %158 = vector.shape_cast %157 : vector<2xf32> to vector<2x1xf32>
    %c0_138 = arith.constant 0 : index
    %159 = memref.load %arg0[%c0_138] : memref<1xf32, #tpu.memory_space<smem>>
    %160 = vector.broadcast %159 : f32 to vector<2x1xf32>
    %161 = arith.addf %158, %160 : vector<2x1xf32>
    %cst_139 = arith.constant 0.000000e+00 : f32
    %162 = vector.broadcast %cst_139 : f32 to vector<2x1xf32>
    %163 = arith.subf %162, %161 : vector<2x1xf32>
    %164 = math.exp %163 : vector<2x1xf32>
    %cst_140 = arith.constant 1.000000e+00 : f32
    %165 = vector.broadcast %cst_140 : f32 to vector<2x1xf32>
    %166 = arith.addf %165, %164 : vector<2x1xf32>
    %cst_141 = arith.constant 1.000000e+00 : f32
    %167 = vector.broadcast %cst_141 : f32 to vector<2x1xf32>
    %168 = arith.divf %167, %166 : vector<2x1xf32>
    %c0_142 = arith.constant 0 : index
    %c0_143 = arith.constant 0 : index
    %169 = vector.load %arg10[%c0_142, %c0_143] : memref<2x1xf32, #tpu.memory_space<vmem>>, vector<2x1xf32>
    tpu.vector_store %arg10[%c0_142, %c0_143], %168 {strides = array<i32>} : memref<2x1xf32, #tpu.memory_space<vmem>>, vector<2x1xf32>,
    return
  }
}

</mosaic_0001>

<bundles_post_ra>
// kernel: discriminator_forward.1
= control target key start
LH: loop header
LB: loop body
LE: loop exit
PB: predicated region body
PF: predicated region fallthrough
CT: control target
= control target key end

     0   :  { %16 = vsyncpa [#allocation4], 0  ;;  %s6743_s13 = smov [#allocation3]   ;;  %s7470_s0 = inlined_call_operand.<no memory space> [shape: f32[1], index: 0, kind: input, shape index: {}]   ;;  %s7471_s1 = inlined_call_operand.vmem [shape: f32[128,16], index: 1, kind: input, shape index: {}]   ;;  %s7472_s2 = inlined_call_operand.vmem [shape: f32[16,128], index: 2, kind: input, shape index: {}]   ;;  %s7473_s3 = inlined_call_operand.vmem [shape: f32[1,128], index: 3, kind: input, shape index: {}]   ;;  %s7474_s4 = inlined_call_operand.vmem [shape: f32[16,32,128], index: 4, kind: input, shape index: {}]   ;;  %s7475_s5 = inlined_call_operand.hbm [shape: f32[16,128,128], index: 5, kind: input, shape index: {}]   ;;  %s7476_s6 = inlined_call_operand.vmem [shape: f32[1,128], index: 6, kind: input, shape index: {}]   ;;  %s7477_s7 = inlined_call_operand.vmem [shape: f32[1,128], index: 7, kind: input, shape index: {}]   ;;  %s7478_s8 = inlined_call_operand.vmem [shape: f32[32,128], index: 8, kind: input, shape index: {}]   ;;  %s7479_s9 = inlined_call_operand.vmem [shape: f32[2,32], index: 9, kind: input, shape index: {}]   ;;  %s7480_s10 = inlined_call_operand.vmem [shape: f32[2,1], index: 10, kind: output, shape index: {}]  }
   0x1   :  { %s32_s14 = sshll.u32 %s6743_s13, 4  ;;  %s6719_s17 = scalar_lea.hbm %s7475_s5, 32768  ;;  %s33_s14 = int_to_ptr.vmem [resolvable:$true] %s32_s14 }
   0x2   :  { %p6720_p0 = scmp.ne.s32.totalorder %s7475_s5, %s6719_s17  ;;  %p6723_p1 = scmp.lt.u32.totalorder %s6719_s17, %s7475_s5 }
   0x4   :  { %p6725_p2 = pnand %p6723_p1, %p6720_p0 }
   0x6   :  { %6728 = shalt.err (!%p6725_p2)
}
   0x7   :  { %s6729_s22 = scalar_lea.vmem %s33_s14, 32768  ;;  %p6734_p4 = scmp.lt.s32.totalorder %s33_s14, %s33_s14 }
   0x8   :  { %p6730_p3 = scmp.ne.s32.totalorder %s33_s14, %s6729_s22  ;;  %p6735_p5 = scmp.lt.s32.totalorder %s6729_s22, %s6729_s22 }
   0xa   :  { %p6736_p6 = por %p6735_p5, %p6734_p4 }
   0xc   :  { %p6737_p7 = pnand %p6736_p6, %p6730_p3 }
   0xe   :  { %6740 = shalt.err (!%p6737_p7)
}
   0xf   :  { %s6744_s23 = smov 128   ;;  %s6745_s24 = smov 8  }
  0x10   :  { %38 = dma.hbm_to_vmem [thread:$0]  %s7475_s5, 32768, %s33_s14, [#allocation4], %s6744_s23, %s6744_s23, %s6745_s24  }
  0x11   :  { %6741 = dma.done.wait [#allocation4], 32768  }
  0x12   :  { %6742 = vsyncadd [#allocation4], 4294934528  ;;  %vm75_vm0 = vcmask 130048   ;;  %v66_v0 = vld [vmem:[%s7472_s2] sm:$0xff]  ;;  %v67_v1 = vld [vmem:[%s7472_s2 + $0x8] sm:$0xff] }
  0x13   :  { %v50_v2 = vld [vmem:[%s7471_s1] sm:$0xff]  ;;  %v5613_v3 = vpack.c.bf16 %v67_v1, %v66_v0  ;;  %v51_v4 = vld [vmem:[%s7471_s1 + $0x8] sm:$0xff]  ;;  %v52_v5 = vld [vmem:[%s7471_s1 + $0x10] sm:$0xff] }
  0x14   :  { %4362 = vmatprep.mubr.msk.f32.mxu1 %vm75_vm0, %v50_v2  ;;  %v53_v6 = vld [vmem:[%s7471_s1 + $0x18] sm:$0xff]  ;;  %v54_v7 = vld [vmem:[%s7471_s1 + $0x20] sm:$0xff]  ;;  %v55_v8 = vld [vmem:[%s7471_s1 + $0x28] sm:$0xff] }
  0x15   :  { %5614 = vmatprep.subr.bf16.mxu1 %v5613_v3  ;;  %v56_v9 = vld [vmem:[%s7471_s1 + $0x30] sm:$0xff]  ;;  %v57_v10 = vld [vmem:[%s7471_s1 + $0x38] sm:$0xff]  ;;  %v58_v11 = vld [vmem:[%s7471_s1 + $0x40] sm:$0xff] }
  0x16   :  { %5616 = vmatpush3.bf16.msra.mxu1 %v5613_v3  ;;  %v59_v12 = vld [vmem:[%s7471_s1 + $0x48] sm:$0xff]  ;;  %v60_v13 = vld [vmem:[%s7471_s1 + $0x50] sm:$0xff]  ;;  %v61_v14 = vld [vmem:[%s7471_s1 + $0x58] sm:$0xff] }
  0x17   :  { %v62_v15 = vld [vmem:[%s7471_s1 + $0x60] sm:$0xff]  ;;  %v63_v16 = vld [vmem:[%s7471_s1 + $0x68] sm:$0xff]  ;;  %v64_v17 = vld [vmem:[%s7471_s1 + $0x70] sm:$0xff] }
  0x18   :  { %v65_v18 = vld [vmem:[%s7471_s1 + $0x78] sm:$0xff]  ;;  %v317_v19 = vld [vmem:[%s7474_s4] sm:$0xff] }
  0x19   :  { %4363 = vmatmul.mubr.msk.f32.vlgmr.msra.gmra.mrb[0].mxu1 %vm75_vm0, %v51_v4  ;;  %4418 = vmatprep.mubr.f32.mxu0 %v317_v19  ;;  %v6892_v20 = vld [vmem:[%s7473_s3] ss:$0 sm:$0xff] }
  0x1a   :  { %4365 = vmatprep.mubr.msk.f32.mxu1 %vm75_vm0, %v52_v5 }
  0x1d   :  { %4366 = vmatmul.mubr.msk.f32.gmra.mrb[2].mxu1 %vm75_vm0, %v53_v6 }
  0x1e   :  { %4368 = vmatprep.mubr.msk.f32.mxu1 %vm75_vm0, %v54_v7 }
  0x21   :  { %4369 = vmatmul.mubr.msk.f32.gmra.mrb[4].mxu1 %vm75_vm0, %v55_v8 }
  0x22   :  { %4371 = vmatprep.mubr.msk.f32.mxu1 %vm75_vm0, %v56_v9 }
  0x25   :  { %4372 = vmatmul.mubr.msk.f32.gmra.mrb[6].mxu1 %vm75_vm0, %v57_v10 }
  0x26   :  { %4374 = vmatprep.mubr.msk.f32.mxu1 %vm75_vm0, %v58_v11 }
  0x29   :  { %4375 = vmatmul.mubr.msk.f32.gmra.mrb[8].mxu1 %vm75_vm0, %v59_v12 }
  0x2a   :  { %4377 = vmatprep.mubr.msk.f32.mxu1 %vm75_vm0, %v60_v13 }
  0x2d   :  { %4378 = vmatmul.mubr.msk.f32.gmra.mrb[10].mxu1 %vm75_vm0, %v61_v14 }
  0x2e   :  { %4380 = vmatprep.mubr.msk.f32.mxu1 %vm75_vm0, %v62_v15 }
  0x31   :  { %4381 = vmatmul.mubr.msk.f32.gmra.mrb[12].mxu1 %vm75_vm0, %v63_v16 }
  0x32   :  { %4383 = vmatprep.mubr.msk.f32.mxu1 %vm75_vm0, %v64_v17 }
  0x35   :  { %4384 = vmatmul.mubr.msk.f32.gmra.mrb[14].mxu1 %vm75_vm0, %v65_v18 }
  0xec   :  { %v4364_v21 = vpop.f32.mrb[0].mxu1 }
  0xed   :  { %v196_v22 = vadd.f32 %v4364_v21, %v6892_v20  ;;  %v190_v23 = vpop.f32.mrb[1].mxu1 }
  0xee   :  { %v191_v24 = vadd.f32 %v6892_v20, %v190_v23 }
  0xef   :  { %vm270_vm1 = vcmp.gt.f32.partialorder %v196_v22, 0.0  ;;  %v286_v25 = vmul.f32 0.2, %v196_v22 }
  0xf0   :  { %vm269_vm2 = vcmp.gt.f32.partialorder %v191_v24, 0.0  ;;  %v285_v26 = vmul.f32 0.2, %v191_v24  ;;  %v4367_v27 = vpop.f32.mrb[2].mxu1 }
  0xf1   :  { %v302_v28 = vsel %vm270_vm1, %v196_v22, %v286_v25  ;;  %v206_v29 = vadd.f32 %v4367_v27, %v6892_v20  ;;  %v200_v30 = vpop.f32.mrb[3].mxu1  ;;  %vm6747_vm1 = vmmov 0  }
  0xf2   :  { %v301_v31 = vsel %vm269_vm2, %v191_v24, %v285_v26  ;;  %v201_v32 = vadd.f32 %v6892_v20, %v200_v30  ;;  %v319_v30 = vld [vmem:[%s7474_s4 + $0x10] sm:$0xff] }
  0xf3   :  { %v6898_v33 = vpack.c.bf16 %v302_v28, %v301_v31  ;;  %vm272_vm3 = vcmp.gt.f32.partialorder %v206_v29, 0.0  ;;  %v288_v34 = vmul.f32 0.2, %v206_v29  ;;  %v320_v31 = vld [vmem:[%s7474_s4 + $0x18] sm:$0xff] }
  0xf4   :  { %vm271_vm4 = vcmp.gt.f32.partialorder %v201_v32, 0.0  ;;  %v287_v35 = vmul.f32 0.2, %v201_v32  ;;  %v4370_v36 = vpop.f32.mrb[4].mxu1 }
  0xf5   :  { %v304_v37 = vsel %vm272_vm3, %v206_v29, %v288_v34  ;;  %v216_v38 = vadd.f32 %v4370_v36, %v6892_v20  ;;  %v210_v39 = vpop.f32.mrb[5].mxu1  ;;  %5618 = vmatprep.subr.bf16.mxu0 %v6898_v33  ;;  %v3633_v34 = vld [vmem:[%s7474_s4 + $0x28] sm:$0xff]  ;;  %v3635_v36 = vld [vmem:[%s7474_s4 + $0x38] sm:$0xff] }
  0xf6   :  { %v303_v40 = vsel %vm271_vm4, %v201_v32, %v287_v35  ;;  %v211_v41 = vadd.f32 %v6892_v20, %v210_v39  ;;  %5620 = vmatpush3.bf16.msra.mxu0 %v6898_v33  ;;  %v3632_v32 = vld [vmem:[%s7474_s4 + $0x20] sm:$0xff]  ;;  %v3634_v35 = vld [vmem:[%s7474_s4 + $0x30] sm:$0xff] }
  0xf7   :  { %v6904_v42 = vpack.c.bf16 %v304_v37, %v303_v40  ;;  %vm274_vm5 = vcmp.gt.f32.partialorder %v216_v38, 0.0  ;;  %v290_v43 = vmul.f32 0.2, %v216_v38  ;;  %v3636_v37 = vld [vmem:[%s7474_s4 + $0x40] sm:$0xff]  ;;  %v3638_v39 = vld [vmem:[%s7474_s4 + $0x50] sm:$0xff]  ;;  %v3639_v40 = vld [vmem:[%s7474_s4 + $0x58] sm:$0xff] }
  0xf8   :  { %vm273_vm6 = vcmp.gt.f32.partialorder %v211_v41, 0.0  ;;  %v289_v44 = vmul.f32 0.2, %v211_v41  ;;  %v4373_v45 = vpop.f32.mrb[6].mxu1 }
  0xf9   :  { %v306_v46 = vsel %vm274_vm5, %v216_v38, %v290_v43  ;;  %v226_v47 = vadd.f32 %v4373_v45, %v6892_v20  ;;  %v220_v48 = vpop.f32.mrb[7].mxu1  ;;  %5622 = vmatprep.subr.bf16.mxu0 %v6904_v42  ;;  %v3637_v38 = vld [vmem:[%s7474_s4 + $0x48] sm:$0xff]  ;;  %v513_v43 = vld [vmem:[#allocation3 + $0x80] sm:$0xff] }
  0xfa   :  { %v305_v49 = vsel %vm273_vm6, %v211_v41, %v289_v44  ;;  %v221_v50 = vadd.f32 %v6892_v20, %v220_v48  ;;  %5624 = vmatpush3.bf16.msra.mxu0 %v6904_v42  ;;  %v3640_v41 = vld [vmem:[%s7474_s4 + $0x60] sm:$0xff]  ;;  %v514_v44 = vld [vmem:[#allocation3 + $0x88] sm:$0xff]  ;;  %vm3521_vm6 = vcmask 261120  }
  0xfb   :  { %v6910_v51 = vpack.c.bf16 %v306_v46, %v305_v49  ;;  %vm276_vm7 = vcmp.gt.f32.partialorder %v226_v47, 0.0  ;;  %v292_v52 = vmul.f32 0.2, %v226_v47  ;;  %v5681_v45 = vpack.c.bf16 %v514_v44, %v513_v43  ;;  %v515_v46 = vld [vmem:[#allocation3 + $0x90] sm:$0xff]  ;;  %v517_v49 = vld [vmem:[#allocation3 + $0xa0] sm:$0xff]  ;;  %v411_v44 = vld [vmem:[#allocation3 + $0x28] sm:$0xff] }
  0xfc   :  { %vm275_vm8 = vcmp.gt.f32.partialorder %v221_v50, 0.0  ;;  %v291_v53 = vmul.f32 0.2, %v221_v50  ;;  %v4376_v54 = vpop.f32.mrb[8].mxu1  ;;  %v410_v43 = vld [vmem:[#allocation3 + $0x20] sm:$0xff] }
  0xfd   :  { %v308_v55 = vsel %vm276_vm7, %v226_v47, %v292_v52  ;;  %v236_v56 = vadd.f32 %v4376_v54, %v6892_v20  ;;  %v230_v57 = vpop.f32.mrb[9].mxu1  ;;  %5626 = vmatprep.subr.bf16.mxu0 %v6910_v51  ;;  %5682 = vmatprep.subr.bf16.mxu1 %v5681_v45  ;;  %v516_v47 = vld [vmem:[#allocation3 + $0x98] sm:$0xff]  ;;  %v3642_v54 = vld [vmem:[%s7474_s4 + $0x70] sm:$0xff]  ;;  %vm3595_vm7 = vcmask 1041408  }
  0xfe   :  { %v307_v58 = vsel %vm275_vm8, %v221_v50, %v291_v53  ;;  %v231_v59 = vadd.f32 %v6892_v20, %v230_v57  ;;  %5628 = vmatpush3.bf16.msra.mxu0 %v6910_v51  ;;  %5684 = vmatpush3.bf16.msra.mxu1 %v5681_v45  ;;  %v5685_v48 = vpack.c.bf16 %v516_v47, %v515_v46  ;;  %v518_v50 = vld [vmem:[#allocation3 + $0xa8] sm:$0xff]  ;;  %vm3608_vm8 = vcmask 1024  }
  0xff   :  { %v6916_v60 = vpack.c.bf16 %v308_v55, %v307_v58  ;;  %vm278_vm9 = vcmp.gt.f32.partialorder %v236_v56, 0.0  ;;  %v294_v61 = vmul.f32 0.2, %v236_v56  ;;  %v5689_v52 = vpack.c.bf16 %v518_v50, %v517_v49  ;;  %v3641_v53 = vld [vmem:[%s7474_s4 + $0x68] sm:$0xff]  ;;  %v519_v55 = vld [vmem:[#allocation3 + $0xb0] sm:$0xff]  ;;  %v3643_v58 = vld [vmem:[%s7474_s4 + $0x78] sm:$0xff] }
 0x100   :  { %vm277_vm10 = vcmp.gt.f32.partialorder %v231_v59, 0.0  ;;  %v293_v62 = vmul.f32 0.2, %v231_v59  ;;  %v4379_v63 = vpop.f32.mrb[10].mxu1  ;;  %5686 = vmatprep.subr.bf16.mxu1 %v5685_v48  ;;  %v5721_v47 = vpack.c.bf16 %v411_v44, %v410_v43  ;;  %v413_v49 = vld [vmem:[#allocation3 + $0x38] sm:$0xff]  ;;  %v986_v43 = vld [vmem:[#allocation3 + $0x180] sm:$0xff] }
 0x101   :  { %v310_v0 = vsel %vm278_vm9, %v236_v56, %v294_v61  ;;  %v246_v1 = vadd.f32 %v4379_v63, %v6892_v20  ;;  %v240_v2 = vpop.f32.mrb[11].mxu1  ;;  %5630 = vmatprep.subr.bf16.mxu0 %v6916_v60  ;;  %v520_v56 = vld [vmem:[#allocation3 + $0xb8] sm:$0xff]  ;;  %v521_v61 = vld [vmem:[#allocation3 + $0xc0] sm:$0xff]  ;;  %v987_v44 = vld [vmem:[#allocation3 + $0x188] sm:$0xff] }
 0x102   :  { %v309_v3 = vsel %vm277_vm10, %v231_v59, %v293_v62  ;;  %v241_v4 = vadd.f32 %v6892_v20, %v240_v2  ;;  %5632 = vmatpush3.bf16.msra.mxu0 %v6916_v60  ;;  %5688 = vmatpush3.bf16.msra.mxu1 %v5685_v48  ;;  %v5693_v57 = vpack.c.bf16 %v520_v56, %v519_v55  ;;  %v3644_v59 = vld [vmem:[%s7474_s4 + $0x80] sm:$0xff]  ;;  %v522_v62 = vld [vmem:[#allocation3 + $0xc8] sm:$0xff]  ;;  %v412_v48 = vld [vmem:[#allocation3 + $0x30] sm:$0xff] }
 0x103   :  { %v6922_v5 = vpack.c.bf16 %v310_v0, %v309_v3  ;;  %vm280_vm11 = vcmp.gt.f32.partialorder %v246_v1, 0.0  ;;  %v296_v6 = vmul.f32 0.2, %v246_v1  ;;  %5690 = vmatprep.subr.bf16.mxu1 %v5689_v52  ;;  %v5697_v63 = vpack.c.bf16 %v522_v62, %v521_v61  ;;  %v523_v0 = vld [vmem:[#allocation3 + $0xd0] sm:$0xff]  ;;  %v525_v3 = vld [vmem:[#allocation3 + $0xe0] sm:$0xff] }
 0x104   :  { %vm279_vm12 = vcmp.gt.f32.partialorder %v241_v4, 0.0  ;;  %v295_v7 = vmul.f32 0.2, %v241_v4  ;;  %v4382_v8 = vpop.f32.mrb[12].mxu1  ;;  %v5725_v50 = vpack.c.bf16 %v413_v49, %v412_v48  ;;  %v3662_v55 = vld [vmem:[%s7474_s4 + $0x110] sm:$0xff]  ;;  %v3664_v61 = vld [vmem:[%s7474_s4 + $0x120] sm:$0xff] }
 0x105   :  { %v312_v9 = vsel %vm280_vm11, %v246_v1, %v296_v6  ;;  %v256_v10 = vadd.f32 %v4382_v8, %v6892_v20  ;;  %v250_v11 = vpop.f32.mrb[13].mxu1  ;;  %5634 = vmatprep.subr.bf16.mxu0 %v6922_v5  ;;  %v524_v1 = vld [vmem:[#allocation3 + $0xd8] sm:$0xff] }
 0x106   :  { %v311_v12 = vsel %vm279_vm12, %v241_v4, %v295_v7  ;;  %v251_v13 = vadd.f32 %v6892_v20, %v250_v11  ;;  %5636 = vmatpush3.bf16.msra.mxu0 %v6922_v5  ;;  %5692 = vmatpush3.bf16.msra.mxu1 %v5689_v52  ;;  %v5701_v2 = vpack.c.bf16 %v524_v1, %v523_v0  ;;  %v526_v4 = vld [vmem:[#allocation3 + $0xe8] sm:$0xff]  ;;  %v527_v7 = vld [vmem:[#allocation3 + $0xf0] sm:$0xff]  ;;  %v528_v8 = vld [vmem:[#allocation3 + $0xf8] sm:$0xff] }
 0x107   :  { %v6928_v14 = vpack.c.bf16 %v312_v9, %v311_v12  ;;  %vm282_vm13 = vcmp.gt.f32.partialorder %v256_v10, 0.0  ;;  %v298_v15 = vmul.f32 0.2, %v256_v10  ;;  %5694 = vmatprep.subr.bf16.mxu1 %v5693_v57  ;;  %v5705_v6 = vpack.c.bf16 %v526_v4, %v525_v3  ;;  %v407_v11 = vld [vmem:[#allocation3 + $0x8] sm:$0xff]  ;;  %v421_v3 = vld [vmem:[#allocation3 + $0x78] sm:$0xff] }
 0x108   :  { %vm281_vm14 = vcmp.gt.f32.partialorder %v251_v13, 0.0  ;;  %v297_v16 = vmul.f32 0.2, %v251_v13  ;;  %v4385_v17 = vpop.f32.mrb[14].mxu1  ;;  %v5709_v9 = vpack.c.bf16 %v528_v8, %v527_v7  ;;  %v3661_v52 = vld [vmem:[%s7474_s4 + $0x108] sm:$0xff] }
 0x109   :  { %v314_v18 = vsel %vm282_vm13, %v256_v10, %v298_v15  ;;  %v266_v19 = vadd.f32 %v4385_v17, %v6892_v20  ;;  %v260_v21 = vpop.f32.mrb[15].mxu1  ;;  %5638 = vmatprep.subr.bf16.mxu0 %v6928_v14  ;;  %v406_v10 = vld [vmem:[#allocation3] sm:$0xff]  ;;  %v3646_v15 = vld [vmem:[%s7474_s4 + $0x90] sm:$0xff]  ;;  %v419_v0 = vld [vmem:[#allocation3 + $0x68] sm:$0xff] }
 0x10a   :  { %v313_v22 = vsel %vm281_vm14, %v251_v13, %v297_v16  ;;  %v261_v23 = vadd.f32 %v6892_v20, %v260_v21  ;;  %5640 = vmatpush3.bf16.msra.mxu0 %v6928_v14  ;;  %v318_v20 = vld [vmem:[%s7474_s4 + $0x8] sm:$0xff]  ;;  %5696 = vmatpush3.bf16.msra.mxu1 %v5693_v57  ;;  %v7049_v12 = vpack.c.bf16 %v407_v11, %v406_v10  ;;  %v3647_v16 = vld [vmem:[%s7474_s4 + $0x98] sm:$0xff]  ;;  %v3648_v17 = vld [vmem:[%s7474_s4 + $0xa0] sm:$0xff] }
 0x10b   :  { %v6934_v24 = vpack.c.bf16 %v314_v18, %v313_v22  ;;  %vm284_vm15 = vcmp.gt.f32.partialorder %v266_v19, 0.0  ;;  %v300_v25 = vmul.f32 0.2, %v266_v19  ;;  %5698 = vmatprep.subr.bf16.mxu1 %v5697_v63  ;;  %v3645_v13 = vld [vmem:[%s7474_s4 + $0x88] sm:$0xff]  ;;  %v3651_v21 = vld [vmem:[%s7474_s4 + $0xb8] sm:$0xff]  ;;  %v3652_v22 = vld [vmem:[%s7474_s4 + $0xc0] sm:$0xff] }
 0x10c   :  { %vm283_vm0 = vcmp.gt.f32.partialorder %v261_v23, 0.0  ;;  %v299_v26 = vmul.f32 0.2, %v261_v23  ;;  %v3649_v18 = vld [vmem:[%s7474_s4 + $0xa8] sm:$0xff]  ;;  %v416_v57 = vld [vmem:[#allocation3 + $0x50] sm:$0xff]  ;;  %v793_v10 = vld [vmem:[#allocation3 + $0x118] sm:$0xff] }
 0x10d   :  { %v316_v27 = vsel %vm284_vm15, %v266_v19, %v300_v25  ;;  %5642 = vmatprep.subr.bf16.mxu0 %v6934_v24  ;;  %v3650_v19 = vld [vmem:[%s7474_s4 + $0xb0] sm:$0xff]  ;;  %v791_v7 = vld [vmem:[#allocation3 + $0x108] sm:$0xff] }
 0x10e   :  { %v315_v28 = vsel %vm283_vm0, %v261_v23, %v299_v26  ;;  %5644 = vmatpush3.bf16.msra.mxu0 %v6934_v24  ;;  %5700 = vmatpush3.bf16.msra.mxu1 %v5697_v63  ;;  %v3653_v23 = vld [vmem:[%s7474_s4 + $0xc8] sm:$0xff]  ;;  %v3654_v25 = vld [vmem:[%s7474_s4 + $0xd0] sm:$0xff]  ;;  %v3655_v26 = vld [vmem:[%s7474_s4 + $0xd8] sm:$0xff] }
 0x10f   :  { %v6938_v29 = vpack.c.bf16 %v316_v27, %v315_v28  ;;  %5702 = vmatprep.subr.bf16.mxu1 %v5701_v2  ;;  %v3656_v27 = vld [vmem:[%s7474_s4 + $0xe0] sm:$0xff] }
 0x110   :  { %v418_v63 = vld [vmem:[#allocation3 + $0x60] sm:$0xff] }
 0x111   :  { %5646 = vmatprep.subr.bf16.mxu0 %v6938_v29  ;;  %v5737_v1 = vpack.c.bf16 %v419_v0, %v418_v63  ;;  %v995_v63 = vld [vmem:[#allocation3 + $0x1c8] sm:$0xff]  ;;  %v3670_v0 = vld [vmem:[%s7474_s4 + $0x150] sm:$0xff] }
 0x112   :  { %5648 = vmatpush3.bf16.msra.mxu0 %v6938_v29  ;;  %5704 = vmatpush3.bf16.msra.mxu1 %v5701_v2  ;;  %v420_v2 = vld [vmem:[#allocation3 + $0x70] sm:$0xff] }
 0x113   :  { %5650 = vmatprep.subr.bf16.mxu0 %v6898_v33  ;;  %5706 = vmatprep.subr.bf16.mxu1 %v5705_v6  ;;  %v5741_v4 = vpack.c.bf16 %v421_v3, %v420_v2  ;;  %v996_v2 = vld [vmem:[#allocation3 + $0x1d0] sm:$0xff]  ;;  %v997_v3 = vld [vmem:[#allocation3 + $0x1d8] sm:$0xff] }
 0x115   :  { %4419 = vmatmul.mubr.f32.vlgmr.msra.gmra.mrb[0].mxu0 %v318_v20 }
 0x116   :  { %5652 = vmatpush3.bf16.msra.mxu0 %v6898_v33  ;;  %4421 = vmatprep.mubr.f32.mxu0 %v319_v30 }
 0x117   :  { %5654 = vmatprep.subr.bf16.mxu0 %v6904_v42  ;;  %5708 = vmatpush3.bf16.msra.mxu1 %v5705_v6  ;;  %v790_v6 = vld [vmem:[#allocation3 + $0x100] sm:$0xff] }
 0x118   :  { %5710 = vmatprep.subr.bf16.mxu1 %v5709_v9  ;;  %v5777_v8 = vpack.c.bf16 %v791_v7, %v790_v6  ;;  %v3672_v6 = vld [vmem:[%s7474_s4 + $0x160] sm:$0xff]  ;;  %v5861_v7 = vpack.c.bf16 %v997_v3, %v996_v2  ;;  %v1384_v2 = vld [vmem:[#allocation3 + $0x2b0] sm:$0xff]  ;;  %v1385_v3 = vld [vmem:[#allocation3 + $0x2b8] sm:$0xff] }
 0x119   :  { %4422 = vmatmul.mubr.f32.gmra.mrb[2].mxu0 %v320_v31 }
 0x11a   :  { %5656 = vmatpush3.bf16.msra.mxu0 %v6904_v42  ;;  %4456 = vmatprep.mubr.f32.mxu0 %v3632_v32  ;;  %v3657_v32 = vld [vmem:[%s7474_s4 + $0xe8] sm:$0xff] }
 0x11b   :  { %5658 = vmatprep.subr.bf16.mxu0 %v6910_v51  ;;  %5712 = vmatpush3.bf16.msra.mxu1 %v5709_v9  ;;  %v792_v9 = vld [vmem:[#allocation3 + $0x110] sm:$0xff] }
 0x11c   :  { %5714 = vmatprep.subr.bf16.mxu1 %v7049_v12 }
 0x11e   :  { %5660 = vmatpush3.bf16.msra.mxu0 %v6910_v51 }
 0x11f   :  { %5662 = vmatprep.subr.bf16.mxu0 %v6916_v60 }
 0x122   :  { %5664 = vmatpush3.bf16.msra.mxu0 %v6916_v60 }
 0x123   :  { %5666 = vmatprep.subr.bf16.mxu0 %v6922_v5 }
 0x126   :  { %5668 = vmatpush3.bf16.msra.mxu0 %v6922_v5 }
 0x127   :  { %5670 = vmatprep.subr.bf16.mxu0 %v6928_v14 }
 0x12a   :  { %5672 = vmatpush3.bf16.msra.mxu0 %v6928_v14 }
 0x12b   :  { %5674 = vmatprep.subr.bf16.mxu0 %v6934_v24 }
 0x12e   :  { %5676 = vmatpush3.bf16.msra.mxu0 %v6934_v24 }
 0x12f   :  { %5678 = vmatprep.subr.bf16.mxu0 %v6938_v29 }
 0x132   :  { %5680 = vmatpush3.bf16.msra.mxu0 %v6938_v29 }
 0x133   :  { %5746 = vmatprep.subr.bf16.mxu0 %v6898_v33 }
 0x135   :  { %4457 = vmatmul.mubr.f32.vlgmr.msra.gmra.mrb[4].mxu0 %v3633_v34  ;;  %v3658_v34 = vld [vmem:[%s7474_s4 + $0xf0] sm:$0xff] }
 0x136   :  { %5748 = vmatpush3.bf16.msra.mxu0 %v6898_v33  ;;  %4459 = vmatprep.mubr.f32.mxu0 %v3634_v35  ;;  %v3659_v35 = vld [vmem:[%s7474_s4 + $0xf8] sm:$0xff] }
 0x137   :  { %5750 = vmatprep.subr.bf16.mxu0 %v6904_v42 }
 0x139   :  { %4460 = vmatmul.mubr.f32.gmra.mrb[6].mxu0 %v3635_v36  ;;  %v3660_v36 = vld [vmem:[%s7474_s4 + $0x100] sm:$0xff] }
 0x13a   :  { %5752 = vmatpush3.bf16.msra.mxu0 %v6904_v42  ;;  %4570 = vmatprep.mubr.f32.mxu0 %v3636_v37  ;;  %v408_v37 = vld [vmem:[#allocation3 + $0x10] sm:$0xff] }
 0x13b   :  { %5754 = vmatprep.subr.bf16.mxu0 %v6910_v51 }
 0x13e   :  { %5756 = vmatpush3.bf16.msra.mxu0 %v6910_v51 }
 0x13f   :  { %5758 = vmatprep.subr.bf16.mxu0 %v6916_v60 }
 0x142   :  { %5760 = vmatpush3.bf16.msra.mxu0 %v6916_v60 }
 0x143   :  { %5762 = vmatprep.subr.bf16.mxu0 %v6922_v5 }
 0x146   :  { %5764 = vmatpush3.bf16.msra.mxu0 %v6922_v5 }
 0x147   :  { %5766 = vmatprep.subr.bf16.mxu0 %v6928_v14 }
 0x14a   :  { %5768 = vmatpush3.bf16.msra.mxu0 %v6928_v14 }
 0x14b   :  { %5770 = vmatprep.subr.bf16.mxu0 %v6934_v24 }
 0x14e   :  { %5772 = vmatpush3.bf16.msra.mxu0 %v6934_v24 }
 0x14f   :  { %5774 = vmatprep.subr.bf16.mxu0 %v6938_v29 }
 0x152   :  { %5776 = vmatpush3.bf16.msra.mxu0 %v6938_v29 }
 0x153   :  { %5810 = vmatprep.subr.bf16.mxu0 %v6898_v33 }
 0x155   :  { %4571 = vmatmul.mubr.f32.vlgmr.msra.gmra.mrb[8].mxu0 %v3637_v38  ;;  %v409_v38 = vld [vmem:[#allocation3 + $0x18] sm:$0xff] }
 0x156   :  { %5812 = vmatpush3.bf16.msra.mxu0 %v6898_v33  ;;  %4573 = vmatprep.mubr.f32.mxu0 %v3638_v39 }
 0x157   :  { %5814 = vmatprep.subr.bf16.mxu0 %v6904_v42 }
 0x159   :  { %4574 = vmatmul.mubr.f32.gmra.mrb[10].mxu0 %v3639_v40 }
 0x15a   :  { %5816 = vmatpush3.bf16.msra.mxu0 %v6904_v42  ;;  %4646 = vmatprep.mubr.f32.mxu0 %v3640_v41  ;;  %v5717_v41 = vpack.c.bf16 %v409_v38, %v408_v37  ;;  %v803_v37 = vld [vmem:[#allocation3 + $0x168] sm:$0xff] }
 0x15b   :  { %5818 = vmatprep.subr.bf16.mxu0 %v6910_v51 }
 0x15e   :  { %5820 = vmatpush3.bf16.msra.mxu0 %v6910_v51 }
 0x15f   :  { %5822 = vmatprep.subr.bf16.mxu0 %v6916_v60 }
 0x162   :  { %5824 = vmatpush3.bf16.msra.mxu0 %v6916_v60 }
 0x163   :  { %5826 = vmatprep.subr.bf16.mxu0 %v6922_v5 }
 0x166   :  { %5828 = vmatpush3.bf16.msra.mxu0 %v6922_v5 }
 0x167   :  { %5830 = vmatprep.subr.bf16.mxu0 %v6928_v14 }
 0x16a   :  { %5832 = vmatpush3.bf16.msra.mxu0 %v6928_v14 }
 0x16b   :  { %5834 = vmatprep.subr.bf16.mxu0 %v6934_v24 }
 0x16e   :  { %5836 = vmatpush3.bf16.msra.mxu0 %v6934_v24 }
 0x16f   :  { %5838 = vmatprep.subr.bf16.mxu0 %v6938_v29 }
 0x172   :  { %5840 = vmatpush3.bf16.msra.mxu0 %v6938_v29 }
 0x173   :  { %5874 = vmatprep.subr.bf16.mxu0 %v6898_v33 }
 0x175   :  { %4647 = vmatmul.mubr.f32.vlgmr.msra.gmra.mrb[12].mxu0 %v3641_v53  ;;  %v414_v53 = vld [vmem:[#allocation3 + $0x40] sm:$0xff] }
 0x176   :  { %5876 = vmatpush3.bf16.msra.mxu0 %v6898_v33  ;;  %4649 = vmatprep.mubr.f32.mxu0 %v3642_v54  ;;  %v415_v54 = vld [vmem:[#allocation3 + $0x48] sm:$0xff] }
 0x177   :  { %5878 = vmatprep.subr.bf16.mxu0 %v6904_v42  ;;  %v5729_v56 = vpack.c.bf16 %v415_v54, %v414_v53  ;;  %v991_v53 = vld [vmem:[#allocation3 + $0x1a8] sm:$0xff] }
 0x179   :  { %4650 = vmatmul.mubr.f32.gmra.mrb[14].mxu0 %v3643_v58  ;;  %v417_v58 = vld [vmem:[#allocation3 + $0x58] sm:$0xff] }
 0x17a   :  { %5880 = vmatpush3.bf16.msra.mxu0 %v6904_v42  ;;  %4722 = vmatprep.mubr.f32.mxu0 %v3644_v59  ;;  %v3663_v59 = vld [vmem:[%s7474_s4 + $0x118] sm:$0xff]  ;;  %v5733_v62 = vpack.c.bf16 %v417_v58, %v416_v57  ;;  %v992_v57 = vld [vmem:[#allocation3 + $0x1b0] sm:$0xff] }
 0x17b   :  { %5882 = vmatprep.subr.bf16.mxu0 %v6910_v51  ;;  %v993_v58 = vld [vmem:[#allocation3 + $0x1b8] sm:$0xff] }
 0x17e   :  { %5884 = vmatpush3.bf16.msra.mxu0 %v6910_v51 }
 0x17f   :  { %5886 = vmatprep.subr.bf16.mxu0 %v6916_v60 }
 0x182   :  { %5888 = vmatpush3.bf16.msra.mxu0 %v6916_v60 }
 0x183   :  { %5890 = vmatprep.subr.bf16.mxu0 %v6922_v5 }
 0x186   :  { %5892 = vmatpush3.bf16.msra.mxu0 %v6922_v5 }
 0x187   :  { %5894 = vmatprep.subr.bf16.mxu0 %v6928_v14 }
 0x18a   :  { %5896 = vmatpush3.bf16.msra.mxu0 %v6928_v14 }
 0x18b   :  { %5898 = vmatprep.subr.bf16.mxu0 %v6934_v24 }
 0x18e   :  { %5900 = vmatpush3.bf16.msra.mxu0 %v6934_v24 }
 0x18f   :  { %5902 = vmatprep.subr.bf16.mxu0 %v6938_v29 }
 0x192   :  { %5904 = vmatpush3.bf16.msra.mxu0 %v6938_v29 }
 0x193   :  { %5938 = vmatprep.subr.bf16.mxu0 %v6898_v33 }
 0x195   :  { %4723 = vmatmul.mubr.f32.vlgmr.msra.gmra.mrb[16].mxu0 %v3645_v13 }
 0x196   :  { %5940 = vmatpush3.bf16.msra.mxu0 %v6898_v33  ;;  %4725 = vmatprep.mubr.f32.mxu0 %v3646_v15  ;;  %v794_v15 = vld [vmem:[#allocation3 + $0x120] sm:$0xff] }
 0x197   :  { %5942 = vmatprep.subr.bf16.mxu0 %v6904_v42 }
 0x199   :  { %4726 = vmatmul.mubr.f32.gmra.mrb[18].mxu0 %v3647_v16  ;;  %v795_v16 = vld [vmem:[#allocation3 + $0x128] sm:$0xff] }
 0x19a   :  { %5944 = vmatpush3.bf16.msra.mxu0 %v6904_v42  ;;  %4798 = vmatprep.mubr.f32.mxu0 %v3648_v17 }
 0x19b   :  { %5946 = vmatprep.subr.bf16.mxu0 %v6910_v51 }
 0x19e   :  { %5948 = vmatpush3.bf16.msra.mxu0 %v6910_v51 }
 0x19f   :  { %5950 = vmatprep.subr.bf16.mxu0 %v6916_v60 }
 0x1a2   :  { %5952 = vmatpush3.bf16.msra.mxu0 %v6916_v60 }
 0x1a3   :  { %5954 = vmatprep.subr.bf16.mxu0 %v6922_v5 }
 0x1a6   :  { %5956 = vmatpush3.bf16.msra.mxu0 %v6922_v5 }
 0x1a7   :  { %5958 = vmatprep.subr.bf16.mxu0 %v6928_v14 }
 0x1aa   :  { %5960 = vmatpush3.bf16.msra.mxu0 %v6928_v14 }
 0x1ab   :  { %5962 = vmatprep.subr.bf16.mxu0 %v6934_v24 }
 0x1ae   :  { %5964 = vmatpush3.bf16.msra.mxu0 %v6934_v24 }
 0x1af   :  { %5966 = vmatprep.subr.bf16.mxu0 %v6938_v29 }
 0x1b2   :  { %5968 = vmatpush3.bf16.msra.mxu0 %v6938_v29 }
 0x1b3   :  { %6002 = vmatprep.subr.bf16.mxu0 %v6898_v33 }
 0x1b5   :  { %4799 = vmatmul.mubr.f32.vlgmr.msra.gmra.mrb[20].mxu0 %v3649_v18  ;;  %v5785_v18 = vpack.c.bf16 %v795_v16, %v794_v15  ;;  %v1182_v15 = vld [vmem:[#allocation3 + $0x200] sm:$0xff]  ;;  %v1183_v16 = vld [vmem:[#allocation3 + $0x208] sm:$0xff] }
 0x1b6   :  { %6004 = vmatpush3.bf16.msra.mxu0 %v6898_v33  ;;  %4801 = vmatprep.mubr.f32.mxu0 %v3650_v19 }
 0x1b7   :  { %6006 = vmatprep.subr.bf16.mxu0 %v6904_v42 }
 0x1b9   :  { %4802 = vmatmul.mubr.f32.gmra.mrb[22].mxu0 %v3651_v21  ;;  %v796_v21 = vld [vmem:[#allocation3 + $0x130] sm:$0xff] }
 0x1ba   :  { %6008 = vmatpush3.bf16.msra.mxu0 %v6904_v42  ;;  %4874 = vmatprep.mubr.f32.mxu0 %v3652_v22  ;;  %v797_v22 = vld [vmem:[#allocation3 + $0x138] sm:$0xff] }
 0x1bb   :  { %6010 = vmatprep.subr.bf16.mxu0 %v6910_v51 }
 0x1be   :  { %6012 = vmatpush3.bf16.msra.mxu0 %v6910_v51 }
 0x1bf   :  { %6014 = vmatprep.subr.bf16.mxu0 %v6916_v60 }
 0x1c2   :  { %6016 = vmatpush3.bf16.msra.mxu0 %v6916_v60 }
 0x1c3   :  { %6018 = vmatprep.subr.bf16.mxu0 %v6922_v5 }
 0x1c6   :  { %6020 = vmatpush3.bf16.msra.mxu0 %v6922_v5 }
 0x1c7   :  { %6022 = vmatprep.subr.bf16.mxu0 %v6928_v14 }
 0x1ca   :  { %6024 = vmatpush3.bf16.msra.mxu0 %v6928_v14 }
 0x1cb   :  { %6026 = vmatprep.subr.bf16.mxu0 %v6934_v24 }
 0x1ce   :  { %6028 = vmatpush3.bf16.msra.mxu0 %v6934_v24 }
 0x1cf   :  { %6030 = vmatprep.subr.bf16.mxu0 %v6938_v29 }
 0x1d2   :  { %6032 = vmatpush3.bf16.msra.mxu0 %v6938_v29 }
 0x1d3   :  { %6066 = vmatprep.subr.bf16.mxu0 %v6898_v33 }
 0x1d5   :  { %4875 = vmatmul.mubr.f32.vlgmr.msra.gmra.mrb[24].mxu0 %v3653_v23  ;;  %v5789_v23 = vpack.c.bf16 %v797_v22, %v796_v21 }
 0x1d6   :  { %6068 = vmatpush3.bf16.msra.mxu0 %v6898_v33  ;;  %4877 = vmatprep.mubr.f32.mxu0 %v3654_v25  ;;  %v3665_v25 = vld [vmem:[%s7474_s4 + $0x128] sm:$0xff] }
 0x1d7   :  { %6070 = vmatprep.subr.bf16.mxu0 %v6904_v42 }
 0x1d9   :  { %4878 = vmatmul.mubr.f32.gmra.mrb[26].mxu0 %v3655_v26  ;;  %v798_v26 = vld [vmem:[#allocation3 + $0x140] sm:$0xff] }
 0x1da   :  { %6072 = vmatpush3.bf16.msra.mxu0 %v6904_v42  ;;  %4950 = vmatprep.mubr.f32.mxu0 %v3656_v27  ;;  %v799_v27 = vld [vmem:[#allocation3 + $0x148] sm:$0xff] }
 0x1db   :  { %6074 = vmatprep.subr.bf16.mxu0 %v6910_v51 }
 0x1de   :  { %6076 = vmatpush3.bf16.msra.mxu0 %v6910_v51 }
 0x1df   :  { %6078 = vmatprep.subr.bf16.mxu0 %v6916_v60 }
 0x1e2   :  { %6080 = vmatpush3.bf16.msra.mxu0 %v6916_v60 }
 0x1e3   :  { %6082 = vmatprep.subr.bf16.mxu0 %v6922_v5 }
 0x1e6   :  { %6084 = vmatpush3.bf16.msra.mxu0 %v6922_v5 }
 0x1e7   :  { %6086 = vmatprep.subr.bf16.mxu0 %v6928_v14 }
 0x1e8   :  { %v7136_v28 = vpop.f32.mrb[0].mxu0 }
 0x1e9   :  { %v387_v20 = vpop.f32.mrb[1].mxu0 }
 0x1ea   :  { %6088 = vmatpush3.bf16.msra.mxu0 %v6928_v14 }
 0x1eb   :  { %6090 = vmatprep.subr.bf16.mxu0 %v6934_v24 }
 0x1ec   :  { %v7140_v30 = vpop.f32.mrb[2].mxu0 }
 0x1ed   :  { %v7142_v31 = vpop.f32.mrb[3].mxu0 }
 0x1ee   :  { %6092 = vmatpush3.bf16.msra.mxu0 %v6934_v24 }
 0x1ef   :  { %6094 = vmatprep.subr.bf16.mxu0 %v6938_v29 }
 0x1f2   :  { %6096 = vmatpush3.bf16.msra.mxu0 %v6938_v29 }
 0x1f3   :  { %6130 = vmatprep.subr.bf16.mxu0 %v6898_v33 }
 0x1f5   :  { %4951 = vmatmul.mubr.f32.vlgmr.msra.gmra.mrb[28].mxu0 %v3657_v32  ;;  %v3667_v32 = vld [vmem:[%s7474_s4 + $0x138] sm:$0xff] }
 0x1f6   :  { %6132 = vmatpush3.bf16.msra.mxu0 %v6898_v33  ;;  %4953 = vmatprep.mubr.f32.mxu0 %v3658_v34  ;;  %v3668_v34 = vld [vmem:[%s7474_s4 + $0x140] sm:$0xff] }
 0x1f7   :  { %6134 = vmatprep.subr.bf16.mxu0 %v6904_v42 }
 0x1f9   :  { %4954 = vmatmul.mubr.f32.gmra.mrb[30].mxu0 %v3659_v35 }
 0x1fa   :  { %6136 = vmatpush3.bf16.msra.mxu0 %v6904_v42  ;;  %5026 = vmatprep.mubr.f32.mxu0 %v3660_v36  ;;  %v802_v36 = vld [vmem:[#allocation3 + $0x160] sm:$0xff] }
 0x1fb   :  { %6138 = vmatprep.subr.bf16.mxu0 %v6910_v51  ;;  %v5801_v38 = vpack.c.bf16 %v803_v37, %v802_v36  ;;  %v1191_v36 = vld [vmem:[#allocation3 + $0x248] sm:$0xff]  ;;  %v3674_v37 = vld [vmem:[%s7474_s4 + $0x170] sm:$0xff] }
 0x1fe   :  { %6140 = vmatpush3.bf16.msra.mxu0 %v6910_v51 }
 0x1ff   :  { %6142 = vmatprep.subr.bf16.mxu0 %v6916_v60 }
 0x202   :  { %6144 = vmatpush3.bf16.msra.mxu0 %v6916_v60 }
 0x203   :  { %6146 = vmatprep.subr.bf16.mxu0 %v6922_v5 }
 0x206   :  { %6148 = vmatpush3.bf16.msra.mxu0 %v6922_v5 }
 0x207   :  { %6150 = vmatprep.subr.bf16.mxu0 %v6928_v14 }
 0x208   :  { %v4458_v39 = vpop.f32.mrb[4].mxu0 }
 0x209   :  { %v493_v40 = vpop.f32.mrb[5].mxu0 }
 0x20a   :  { %4494 = vmatprep.mubr.f32.mxu1 %v493_v40  ;;  %6152 = vmatpush3.bf16.msra.mxu0 %v6928_v14  ;;  %v805_v40 = vld [vmem:[#allocation3 + $0x178] sm:$0xff] }
 0x20b   :  { %4495 = vmatmul.mubr.f32.vlgmr.msra.gmra.mrb[16].mxu1 %v4458_v39  ;;  %6154 = vmatprep.subr.bf16.mxu0 %v6934_v24  ;;  %v804_v39 = vld [vmem:[#allocation3 + $0x170] sm:$0xff] }
 0x20c   :  { %5716 = vmatpush3.bf16.msra.mxu1 %v7049_v12  ;;  %v4461_v45 = vpop.f32.mrb[6].mxu0  ;;  %v5781_v12 = vpack.c.bf16 %v793_v10, %v792_v9  ;;  %v999_v9 = vld [vmem:[#allocation3 + $0x1e8] sm:$0xff] }
 0x20d   :  { %v503_v46 = vpop.f32.mrb[7].mxu0  ;;  %5718 = vmatprep.subr.bf16.mxu1 %v5717_v41 }
 0x20e   :  { %4497 = vmatprep.mubr.f32.mxu1 %v503_v46  ;;  %6156 = vmatpush3.bf16.msra.mxu0 %v6934_v24  ;;  %v988_v46 = vld [vmem:[#allocation3 + $0x190] sm:$0xff] }
 0x20f   :  { %4498 = vmatmul.mubr.f32.gmra.mrb[18].mxu1 %v4461_v45  ;;  %6158 = vmatprep.subr.bf16.mxu0 %v6938_v29  ;;  %v5841_v45 = vpack.c.bf16 %v987_v44, %v986_v43  ;;  %v3676_v43 = vld [vmem:[%s7474_s4 + $0x180] sm:$0xff] }
 0x210   :  { %5720 = vmatpush3.bf16.msra.mxu1 %v5717_v41  ;;  %4532 = vmatprep.mubr.f32.mxu1 %v387_v20  ;;  %v5793_v20 = vpack.c.bf16 %v799_v27, %v798_v26  ;;  %v5805_v41 = vpack.c.bf16 %v805_v40, %v804_v39  ;;  %v1187_v26 = vld [vmem:[#allocation3 + $0x228] sm:$0xff]  ;;  %v1192_v39 = vld [vmem:[#allocation3 + $0x250] sm:$0xff]  ;;  %v1193_v40 = vld [vmem:[#allocation3 + $0x258] sm:$0xff] }
 0x211   :  { %5722 = vmatprep.subr.bf16.mxu1 %v5721_v47  ;;  %v5925_v44 = vpack.c.bf16 %v1193_v40, %v1192_v39  ;;  %v1580_v39 = vld [vmem:[#allocation3 + $0x330] sm:$0xff]  ;;  %v1581_v40 = vld [vmem:[#allocation3 + $0x338] sm:$0xff] }
 0x212   :  { %6160 = vmatpush3.bf16.msra.mxu0 %v6938_v29 }
 0x213   :  { %6194 = vmatprep.subr.bf16.mxu0 %v6898_v33 }
 0x214   :  { %5724 = vmatpush3.bf16.msra.mxu1 %v5721_v47  ;;  %v989_v47 = vld [vmem:[#allocation3 + $0x198] sm:$0xff] }
 0x215   :  { %5726 = vmatprep.subr.bf16.mxu1 %v5725_v50  ;;  %5027 = vmatmul.mubr.f32.vlgmr.msra.gmra.mrb[32].mxu0 %v3661_v52  ;;  %v5845_v49 = vpack.c.bf16 %v989_v47, %v988_v46  ;;  %v990_v52 = vld [vmem:[#allocation3 + $0x1a0] sm:$0xff]  ;;  %v1195_v46 = vld [vmem:[#allocation3 + $0x268] sm:$0xff] }
 0x216   :  { %6196 = vmatpush3.bf16.msra.mxu0 %v6898_v33  ;;  %5029 = vmatprep.mubr.f32.mxu0 %v3662_v55  ;;  %v5849_v55 = vpack.c.bf16 %v991_v53, %v990_v52  ;;  %v1378_v52 = vld [vmem:[#allocation3 + $0x280] sm:$0xff]  ;;  %v1379_v53 = vld [vmem:[#allocation3 + $0x288] sm:$0xff] }
 0x217   :  { %6198 = vmatprep.subr.bf16.mxu0 %v6904_v42 }
 0x218   :  { %5728 = vmatpush3.bf16.msra.mxu1 %v5725_v50 }
 0x219   :  { %5730 = vmatprep.subr.bf16.mxu1 %v5729_v56  ;;  %5030 = vmatmul.mubr.f32.gmra.mrb[34].mxu0 %v3663_v59  ;;  %v5853_v59 = vpack.c.bf16 %v993_v58, %v992_v57 }
 0x21a   :  { %6200 = vmatpush3.bf16.msra.mxu0 %v6904_v42  ;;  %5102 = vmatprep.mubr.f32.mxu0 %v3664_v61  ;;  %v3669_v61 = vld [vmem:[%s7474_s4 + $0x148] sm:$0xff] }
 0x21b   :  { %6202 = vmatprep.subr.bf16.mxu0 %v6910_v51 }
 0x21c   :  { %5732 = vmatpush3.bf16.msra.mxu1 %v5729_v56 }
 0x21d   :  { %5734 = vmatprep.subr.bf16.mxu1 %v5733_v62 }
 0x21e   :  { %6204 = vmatpush3.bf16.msra.mxu0 %v6910_v51 }
 0x21f   :  { %6206 = vmatprep.subr.bf16.mxu0 %v6916_v60 }
 0x220   :  { %5736 = vmatpush3.bf16.msra.mxu1 %v5733_v62  ;;  %v994_v62 = vld [vmem:[#allocation3 + $0x1c0] sm:$0xff] }
 0x221   :  { %5738 = vmatprep.subr.bf16.mxu1 %v5737_v1 }
 0x222   :  { %6208 = vmatpush3.bf16.msra.mxu0 %v6916_v60 }
 0x223   :  { %6210 = vmatprep.subr.bf16.mxu0 %v6922_v5 }
 0x224   :  { %5740 = vmatpush3.bf16.msra.mxu1 %v5737_v1  ;;  %v5857_v1 = vpack.c.bf16 %v995_v63, %v994_v62  ;;  %v1383_v62 = vld [vmem:[#allocation3 + $0x2a8] sm:$0xff] }
 0x225   :  { %5742 = vmatprep.subr.bf16.mxu1 %v5741_v4 }
 0x226   :  { %6212 = vmatpush3.bf16.msra.mxu0 %v6922_v5 }
 0x227   :  { %6214 = vmatprep.subr.bf16.mxu0 %v6928_v14 }
 0x228   :  { %5744 = vmatpush3.bf16.msra.mxu1 %v5741_v4  ;;  %v7199_v11 = vpop.f32.mrb[8].mxu0  ;;  %v3671_v4 = vld [vmem:[%s7474_s4 + $0x158] sm:$0xff] }
 0x229   :  { %5778 = vmatprep.subr.bf16.mxu1 %v5777_v8  ;;  %v770_v13 = vpop.f32.mrb[9].mxu0 }
 0x22a   :  { %6216 = vmatpush3.bf16.msra.mxu0 %v6928_v14 }
 0x22b   :  { %4533 = vmatmul.mubr.f32.vlgmr.msra.gmra.mrb[16].mxu1 %v7136_v28  ;;  %6218 = vmatprep.subr.bf16.mxu0 %v6934_v24  ;;  %v3666_v28 = vld [vmem:[%s7474_s4 + $0x130] sm:$0xff] }
 0x22c   :  { %4535 = vmatprep.mubr.f32.mxu1 %v7142_v31  ;;  %5780 = vmatpush3.bf16.msra.mxu1 %v5777_v8  ;;  %v7205_v17 = vpop.f32.mrb[10].mxu0  ;;  %v801_v31 = vld [vmem:[#allocation3 + $0x158] sm:$0xff]  ;;  %v998_v8 = vld [vmem:[#allocation3 + $0x1e0] sm:$0xff] }
 0x22d   :  { %5782 = vmatprep.subr.bf16.mxu1 %v5781_v12  ;;  %v7207_v19 = vpop.f32.mrb[11].mxu0  ;;  %v5865_v10 = vpack.c.bf16 %v999_v9, %v998_v8  ;;  %v1387_v8 = vld [vmem:[#allocation3 + $0x2c8] sm:$0xff]  ;;  %v3678_v9 = vld [vmem:[%s7474_s4 + $0x190] sm:$0xff] }
 0x22e   :  { %6220 = vmatpush3.bf16.msra.mxu0 %v6934_v24 }
 0x22f   :  { %4536 = vmatmul.mubr.f32.gmra.mrb[18].mxu1 %v7140_v30  ;;  %6222 = vmatprep.subr.bf16.mxu0 %v6938_v29  ;;  %v800_v30 = vld [vmem:[#allocation3 + $0x150] sm:$0xff] }
 0x230   :  { %5784 = vmatpush3.bf16.msra.mxu1 %v5781_v12  ;;  %4608 = vmatprep.mubr.f32.mxu1 %v770_v13  ;;  %v5797_v35 = vpack.c.bf16 %v801_v31, %v800_v30  ;;  %v1001_v12 = vld [vmem:[#allocation3 + $0x1f8] sm:$0xff]  ;;  %v1188_v30 = vld [vmem:[#allocation3 + $0x230] sm:$0xff] }
 0x231   :  { %5786 = vmatprep.subr.bf16.mxu1 %v5785_v18  ;;  %v1189_v31 = vld [vmem:[#allocation3 + $0x238] sm:$0xff] }
 0x232   :  { %6224 = vmatpush3.bf16.msra.mxu0 %v6938_v29 }
 0x233   :  { %6258 = vmatprep.subr.bf16.mxu0 %v6898_v33 }
 0x234   :  { %5788 = vmatpush3.bf16.msra.mxu1 %v5785_v18  ;;  %v1184_v18 = vld [vmem:[#allocation3 + $0x210] sm:$0xff] }
 0x235   :  { %5790 = vmatprep.subr.bf16.mxu1 %v5789_v23  ;;  %5103 = vmatmul.mubr.f32.vlgmr.msra.gmra.mrb[36].mxu0 %v3665_v25  ;;  %v1186_v25 = vld [vmem:[#allocation3 + $0x220] sm:$0xff] }
 0x236   :  { %6260 = vmatpush3.bf16.msra.mxu0 %v6898_v33  ;;  %5105 = vmatprep.mubr.f32.mxu0 %v3666_v28  ;;  %v5913_v28 = vpack.c.bf16 %v1187_v26, %v1186_v25  ;;  %v1574_v25 = vld [vmem:[#allocation3 + $0x300] sm:$0xff]  ;;  %v1575_v26 = vld [vmem:[#allocation3 + $0x308] sm:$0xff] }
 0x237   :  { %6262 = vmatprep.subr.bf16.mxu0 %v6904_v42 }
 0x238   :  { %5792 = vmatpush3.bf16.msra.mxu1 %v5789_v23 }
 0x239   :  { %5794 = vmatprep.subr.bf16.mxu1 %v5793_v20  ;;  %5106 = vmatmul.mubr.f32.gmra.mrb[38].mxu0 %v3667_v32  ;;  %v5917_v32 = vpack.c.bf16 %v1189_v31, %v1188_v30 }
 0x23a   :  { %6264 = vmatpush3.bf16.msra.mxu0 %v6904_v42  ;;  %5178 = vmatprep.mubr.f32.mxu0 %v3668_v34  ;;  %v3673_v34 = vld [vmem:[%s7474_s4 + $0x168] sm:$0xff] }
 0x23b   :  { %6266 = vmatprep.subr.bf16.mxu0 %v6910_v51 }
 0x23c   :  { %5796 = vmatpush3.bf16.msra.mxu1 %v5793_v20 }
 0x23d   :  { %5798 = vmatprep.subr.bf16.mxu1 %v5797_v35 }
 0x23e   :  { %6268 = vmatpush3.bf16.msra.mxu0 %v6910_v51 }
 0x23f   :  { %6270 = vmatprep.subr.bf16.mxu0 %v6916_v60 }
 0x240   :  { %5800 = vmatpush3.bf16.msra.mxu1 %v5797_v35  ;;  %v1190_v35 = vld [vmem:[#allocation3 + $0x240] sm:$0xff] }
 0x241   :  { %5802 = vmatprep.subr.bf16.mxu1 %v5801_v38 }
 0x242   :  { %6272 = vmatpush3.bf16.msra.mxu0 %v6916_v60 }
 0x243   :  { %6274 = vmatprep.subr.bf16.mxu0 %v6922_v5 }
 0x244   :  { %5804 = vmatpush3.bf16.msra.mxu1 %v5801_v38  ;;  %v5921_v38 = vpack.c.bf16 %v1191_v36, %v1190_v35  ;;  %v1579_v35 = vld [vmem:[#allocation3 + $0x328] sm:$0xff] }
 0x245   :  { %5806 = vmatprep.subr.bf16.mxu1 %v5805_v41 }
 0x246   :  { %6276 = vmatpush3.bf16.msra.mxu0 %v6922_v5 }
 0x247   :  { %6278 = vmatprep.subr.bf16.mxu0 %v6928_v14 }
 0x248   :  { %5808 = vmatpush3.bf16.msra.mxu1 %v5805_v41  ;;  %v7236_v48 = vpop.f32.mrb[12].mxu0  ;;  %v3675_v41 = vld [vmem:[%s7474_s4 + $0x178] sm:$0xff] }
 0x249   :  { %5842 = vmatprep.subr.bf16.mxu1 %v5841_v45  ;;  %v966_v50 = vpop.f32.mrb[13].mxu0 }
 0x24a   :  { %6280 = vmatpush3.bf16.msra.mxu0 %v6928_v14 }
 0x24b   :  { %4609 = vmatmul.mubr.f32.vlgmr.msra.gmra.mrb[16].mxu1 %v7199_v11  ;;  %6282 = vmatprep.subr.bf16.mxu0 %v6934_v24  ;;  %v1000_v11 = vld [vmem:[#allocation3 + $0x1f0] sm:$0xff] }
 0x24c   :  { %5844 = vmatpush3.bf16.msra.mxu1 %v5841_v45  ;;  %4611 = vmatprep.mubr.f32.mxu1 %v7207_v19  ;;  %v7242_v54 = vpop.f32.mrb[14].mxu0  ;;  %v5869_v13 = vpack.c.bf16 %v1001_v12, %v1000_v11  ;;  %v1185_v19 = vld [vmem:[#allocation3 + $0x218] sm:$0xff]  ;;  %v1194_v45 = vld [vmem:[#allocation3 + $0x260] sm:$0xff]  ;;  %v1388_v11 = vld [vmem:[#allocation3 + $0x2d0] sm:$0xff] }
 0x24d   :  { %5846 = vmatprep.subr.bf16.mxu1 %v5845_v49  ;;  %v7244_v56 = vpop.f32.mrb[15].mxu0  ;;  %v5909_v22 = vpack.c.bf16 %v1185_v19, %v1184_v18  ;;  %v5929_v47 = vpack.c.bf16 %v1195_v46, %v1194_v45  ;;  %v1389_v12 = vld [vmem:[#allocation3 + $0x2d8] sm:$0xff]  ;;  %v1391_v18 = vld [vmem:[#allocation3 + $0x2e8] sm:$0xff]  ;;  %v3682_v46 = vld [vmem:[%s7474_s4 + $0x1b0] sm:$0xff] }
 0x24e   :  { %6284 = vmatpush3.bf16.msra.mxu0 %v6934_v24  ;;  %v1583_v45 = vld [vmem:[#allocation3 + $0x348] sm:$0xff] }
 0x24f   :  { %6286 = vmatprep.subr.bf16.mxu0 %v6938_v29  ;;  %4612 = vmatmul.mubr.f32.gmra.mrb[18].mxu1 %v7205_v17  ;;  %v5905_v17 = vpack.c.bf16 %v1183_v16, %v1182_v15  ;;  %v3680_v15 = vld [vmem:[%s7474_s4 + $0x1a0] sm:$0xff]  ;;  %v5989_v16 = vpack.c.bf16 %v1389_v12, %v1388_v11  ;;  %v1776_v11 = vld [vmem:[#allocation3 + $0x3b0] sm:$0xff]  ;;  %v1777_v12 = vld [vmem:[#allocation3 + $0x3b8] sm:$0xff] }
 0x250   :  { %5848 = vmatpush3.bf16.msra.mxu1 %v5845_v49  ;;  %4684 = vmatprep.mubr.f32.mxu1 %v966_v50  ;;  %v1197_v49 = vld [vmem:[#allocation3 + $0x278] sm:$0xff] }
 0x251   :  { %5850 = vmatprep.subr.bf16.mxu1 %v5849_v55 }
 0x252   :  { %6288 = vmatpush3.bf16.msra.mxu0 %v6938_v29 }
 0x253   :  { %6322 = vmatprep.subr.bf16.mxu0 %v6898_v33 }
 0x254   :  { %5852 = vmatpush3.bf16.msra.mxu1 %v5849_v55  ;;  %v1380_v55 = vld [vmem:[#allocation3 + $0x290] sm:$0xff] }
 0x255   :  { %5854 = vmatprep.subr.bf16.mxu1 %v5853_v59  ;;  %5179 = vmatmul.mubr.f32.vlgmr.msra.gmra.mrb[40].mxu0 %v3669_v61  ;;  %v1382_v61 = vld [vmem:[#allocation3 + $0x2a0] sm:$0xff] }
 0x256   :  { %6324 = vmatpush3.bf16.msra.mxu0 %v6898_v33  ;;  %5181 = vmatprep.mubr.f32.mxu0 %v3670_v0  ;;  %v5977_v0 = vpack.c.bf16 %v1383_v62, %v1382_v61  ;;  %v1770_v61 = vld [vmem:[#allocation3 + $0x380] sm:$0xff]  ;;  %v1771_v62 = vld [vmem:[#allocation3 + $0x388] sm:$0xff] }
 0x257   :  { %6326 = vmatprep.subr.bf16.mxu0 %v6904_v42 }
 0x258   :  { %5856 = vmatpush3.bf16.msra.mxu1 %v5853_v59 }
 0x259   :  { %5858 = vmatprep.subr.bf16.mxu1 %v5857_v1  ;;  %5182 = vmatmul.mubr.f32.gmra.mrb[42].mxu0 %v3671_v4  ;;  %v5981_v4 = vpack.c.bf16 %v1385_v3, %v1384_v2 }
 0x25a   :  { %6328 = vmatpush3.bf16.msra.mxu0 %v6904_v42  ;;  %5254 = vmatprep.mubr.f32.mxu0 %v3672_v6  ;;  %v3677_v6 = vld [vmem:[%s7474_s4 + $0x188] sm:$0xff] }
 0x25b   :  { %6330 = vmatprep.subr.bf16.mxu0 %v6910_v51 }
 0x25c   :  { %5860 = vmatpush3.bf16.msra.mxu1 %v5857_v1 }
 0x25d   :  { %5862 = vmatprep.subr.bf16.mxu1 %v5861_v7 }
 0x25e   :  { %6332 = vmatpush3.bf16.msra.mxu0 %v6910_v51 }
 0x25f   :  { %6334 = vmatprep.subr.bf16.mxu0 %v6916_v60 }
 0x260   :  { %5864 = vmatpush3.bf16.msra.mxu1 %v5861_v7  ;;  %v1386_v7 = vld [vmem:[#allocation3 + $0x2c0] sm:$0xff] }
 0x261   :  { %5866 = vmatprep.subr.bf16.mxu1 %v5865_v10 }
 0x262   :  { %6336 = vmatpush3.bf16.msra.mxu0 %v6916_v60 }
 0x263   :  { %6338 = vmatprep.subr.bf16.mxu0 %v6922_v5 }
 0x264   :  { %5868 = vmatpush3.bf16.msra.mxu1 %v5865_v10  ;;  %v5985_v10 = vpack.c.bf16 %v1387_v8, %v1386_v7  ;;  %v1775_v7 = vld [vmem:[#allocation3 + $0x3a8] sm:$0xff] }
 0x265   :  { %5870 = vmatprep.subr.bf16.mxu1 %v5869_v13 }
 0x266   :  { %6340 = vmatpush3.bf16.msra.mxu0 %v6922_v5 }
 0x267   :  { %6342 = vmatprep.subr.bf16.mxu0 %v6928_v14 }
 0x268   :  { %5872 = vmatpush3.bf16.msra.mxu1 %v5869_v13  ;;  %v7273_v21 = vpop.f32.mrb[16].mxu0  ;;  %v3679_v13 = vld [vmem:[%s7474_s4 + $0x198] sm:$0xff] }
 0x269   :  { %5906 = vmatprep.subr.bf16.mxu1 %v5905_v17  ;;  %v1162_v23 = vpop.f32.mrb[17].mxu0 }
 0x26a   :  { %6344 = vmatpush3.bf16.msra.mxu0 %v6928_v14 }
 0x26b   :  { %4685 = vmatmul.mubr.f32.vlgmr.msra.gmra.mrb[16].mxu1 %v7236_v48  ;;  %6346 = vmatprep.subr.bf16.mxu0 %v6934_v24  ;;  %v1196_v48 = vld [vmem:[#allocation3 + $0x270] sm:$0xff] }
 0x26c   :  { %5908 = vmatpush3.bf16.msra.mxu1 %v5905_v17  ;;  %4687 = vmatprep.mubr.f32.mxu1 %v7244_v56  ;;  %v7279_v27 = vpop.f32.mrb[18].mxu0  ;;  %v5933_v50 = vpack.c.bf16 %v1197_v49, %v1196_v48  ;;  %v1381_v56 = vld [vmem:[#allocation3 + $0x298] sm:$0xff]  ;;  %v1390_v17 = vld [vmem:[#allocation3 + $0x2e0] sm:$0xff]  ;;  %v1584_v48 = vld [vmem:[#allocation3 + $0x350] sm:$0xff] }
 0x26d   :  { %5910 = vmatprep.subr.bf16.mxu1 %v5909_v22  ;;  %v7281_v20 = vpop.f32.mrb[19].mxu0  ;;  %v5973_v58 = vpack.c.bf16 %v1381_v56, %v1380_v55  ;;  %v5993_v19 = vpack.c.bf16 %v1391_v18, %v1390_v17  ;;  %v1585_v49 = vld [vmem:[#allocation3 + $0x358] sm:$0xff]  ;;  %v1587_v55 = vld [vmem:[#allocation3 + $0x368] sm:$0xff]  ;;  %v3686_v18 = vld [vmem:[%s7474_s4 + $0x1d0] sm:$0xff] }
 0x26e   :  { %6348 = vmatpush3.bf16.msra.mxu0 %v6934_v24  ;;  %v1779_v17 = vld [vmem:[#allocation3 + $0x3c8] sm:$0xff] }
 0x26f   :  { %6350 = vmatprep.subr.bf16.mxu0 %v6938_v29  ;;  %4688 = vmatmul.mubr.f32.gmra.mrb[18].mxu1 %v7242_v54  ;;  %v5969_v54 = vpack.c.bf16 %v1379_v53, %v1378_v52  ;;  %v3684_v52 = vld [vmem:[%s7474_s4 + $0x1c0] sm:$0xff]  ;;  %v6053_v53 = vpack.c.bf16 %v1585_v49, %v1584_v48  ;;  %v1976_v49 = vld [vmem:[#allocation3 + $0x450] sm:$0xff] }
 0x270   :  { %5912 = vmatpush3.bf16.msra.mxu1 %v5909_v22  ;;  %4760 = vmatprep.mubr.f32.mxu1 %v1162_v23  ;;  %v1393_v22 = vld [vmem:[#allocation3 + $0x2f8] sm:$0xff] }
 0x271   :  { %5914 = vmatprep.subr.bf16.mxu1 %v5913_v28 }
 0x272   :  { %6352 = vmatpush3.bf16.msra.mxu0 %v6938_v29 }
 0x273   :  { %6386 = vmatprep.subr.bf16.mxu0 %v6898_v33 }
 0x274   :  { %5916 = vmatpush3.bf16.msra.mxu1 %v5913_v28  ;;  %v1576_v28 = vld [vmem:[#allocation3 + $0x310] sm:$0xff] }
 0x275   :  { %5918 = vmatprep.subr.bf16.mxu1 %v5917_v32  ;;  %5255 = vmatmul.mubr.f32.vlgmr.msra.gmra.mrb[44].mxu0 %v3673_v34  ;;  %v1578_v34 = vld [vmem:[#allocation3 + $0x320] sm:$0xff] }
 0x276   :  { %6388 = vmatpush3.bf16.msra.mxu0 %v6898_v33  ;;  %5257 = vmatprep.mubr.f32.mxu0 %v3674_v37  ;;  %v6041_v37 = vpack.c.bf16 %v1579_v35, %v1578_v34  ;;  %v1968_v35 = vld [vmem:[#allocation3 + $0x410] sm:$0xff] }
 0x277   :  { %6390 = vmatprep.subr.bf16.mxu0 %v6904_v42 }
 0x278   :  { %5920 = vmatpush3.bf16.msra.mxu1 %v5917_v32 }
 0x279   :  { %5922 = vmatprep.subr.bf16.mxu1 %v5921_v38  ;;  %5258 = vmatmul.mubr.f32.gmra.mrb[46].mxu0 %v3675_v41  ;;  %v6045_v41 = vpack.c.bf16 %v1581_v40, %v1580_v39  ;;  %v1971_v39 = vld [vmem:[#allocation3 + $0x428] sm:$0xff] }
 0x27a   :  { %6392 = vmatpush3.bf16.msra.mxu0 %v6904_v42  ;;  %5330 = vmatprep.mubr.f32.mxu0 %v3676_v43  ;;  %v3681_v43 = vld [vmem:[%s7474_s4 + $0x1a8] sm:$0xff] }
 0x27b   :  { %6394 = vmatprep.subr.bf16.mxu0 %v6910_v51 }
 0x27c   :  { %5924 = vmatpush3.bf16.msra.mxu1 %v5921_v38 }
 0x27d   :  { %5926 = vmatprep.subr.bf16.mxu1 %v5925_v44 }
 0x27e   :  { %6396 = vmatpush3.bf16.msra.mxu0 %v6910_v51 }
 0x27f   :  { %6398 = vmatprep.subr.bf16.mxu0 %v6916_v60 }
 0x280   :  { %5928 = vmatpush3.bf16.msra.mxu1 %v5925_v44  ;;  %v1582_v44 = vld [vmem:[#allocation3 + $0x340] sm:$0xff] }
 0x281   :  { %5930 = vmatprep.subr.bf16.mxu1 %v5929_v47 }
 0x282   :  { %6400 = vmatpush3.bf16.msra.mxu0 %v6916_v60 }
 0x283   :  { %6402 = vmatprep.subr.bf16.mxu0 %v6922_v5 }
 0x284   :  { %5932 = vmatpush3.bf16.msra.mxu1 %v5929_v47  ;;  %v6049_v47 = vpack.c.bf16 %v1583_v45, %v1582_v44  ;;  %v1973_v44 = vld [vmem:[#allocation3 + $0x438] sm:$0xff]  ;;  %v1974_v45 = vld [vmem:[#allocation3 + $0x440] sm:$0xff] }
 0x285   :  { %5934 = vmatprep.subr.bf16.mxu1 %v5933_v50 }
 0x286   :  { %6404 = vmatpush3.bf16.msra.mxu0 %v6922_v5 }
 0x287   :  { %6406 = vmatprep.subr.bf16.mxu0 %v6928_v14 }
 0x288   :  { %5936 = vmatpush3.bf16.msra.mxu1 %v5933_v50  ;;  %v7310_v57 = vpop.f32.mrb[20].mxu0  ;;  %v3683_v50 = vld [vmem:[%s7474_s4 + $0x1b8] sm:$0xff] }
 0x289   :  { %5970 = vmatprep.subr.bf16.mxu1 %v5969_v54  ;;  %v1358_v59 = vpop.f32.mrb[21].mxu0 }
 0x28a   :  { %6408 = vmatpush3.bf16.msra.mxu0 %v6928_v14 }
 0x28b   :  { %4761 = vmatmul.mubr.f32.vlgmr.msra.gmra.mrb[16].mxu1 %v7273_v21  ;;  %6410 = vmatprep.subr.bf16.mxu0 %v6934_v24  ;;  %v1392_v21 = vld [vmem:[#allocation3 + $0x2f0] sm:$0xff] }
 0x28c   :  { %5972 = vmatpush3.bf16.msra.mxu1 %v5969_v54  ;;  %4763 = vmatprep.mubr.f32.mxu1 %v7281_v20  ;;  %v7316_v63 = vpop.f32.mrb[22].mxu0  ;;  %v5997_v23 = vpack.c.bf16 %v1393_v22, %v1392_v21  ;;  %v1577_v20 = vld [vmem:[#allocation3 + $0x318] sm:$0xff]  ;;  %v1586_v54 = vld [vmem:[#allocation3 + $0x360] sm:$0xff]  ;;  %v1780_v21 = vld [vmem:[#allocation3 + $0x3d0] sm:$0xff] }
 0x28d   :  { %5974 = vmatprep.subr.bf16.mxu1 %v5973_v58  ;;  %v7318_v1 = vpop.f32.mrb[23].mxu0  ;;  %v6037_v31 = vpack.c.bf16 %v1577_v20, %v1576_v28  ;;  %v6057_v56 = vpack.c.bf16 %v1587_v55, %v1586_v54  ;;  %v1781_v22 = vld [vmem:[#allocation3 + $0x3d8] sm:$0xff]  ;;  %v1784_v20 = vld [vmem:[#allocation3 + $0x3f0] sm:$0xff]  ;;  %v1979_v54 = vld [vmem:[#allocation3 + $0x468] sm:$0xff] }
 0x28e   :  { %6412 = vmatpush3.bf16.msra.mxu0 %v6934_v24 }
 0x28f   :  { %6414 = vmatprep.subr.bf16.mxu0 %v6938_v29  ;;  %4764 = vmatmul.mubr.f32.gmra.mrb[18].mxu1 %v7279_v27  ;;  %v6033_v27 = vpack.c.bf16 %v1575_v26, %v1574_v25  ;;  %v3688_v25 = vld [vmem:[%s7474_s4 + $0x1e0] sm:$0xff]  ;;  %v6117_v26 = vpack.c.bf16 %v1781_v22, %v1780_v21  ;;  %v2175_v22 = vld [vmem:[#allocation3 + $0x4e8] sm:$0xff] }
 0x290   :  { %5976 = vmatpush3.bf16.msra.mxu1 %v5973_v58  ;;  %4836 = vmatprep.mubr.f32.mxu1 %v1358_v59  ;;  %v1589_v58 = vld [vmem:[#allocation3 + $0x378] sm:$0xff]  ;;  %v2174_v21 = vld [vmem:[#allocation3 + $0x4e0] sm:$0xff] }
 0x291   :  { %5978 = vmatprep.subr.bf16.mxu1 %v5977_v0 }
 0x292   :  { %6416 = vmatpush3.bf16.msra.mxu0 %v6938_v29 }
 0x293   :  { %6450 = vmatprep.subr.bf16.mxu0 %v6898_v33 }
 0x294   :  { %5980 = vmatpush3.bf16.msra.mxu1 %v5977_v0  ;;  %v1772_v0 = vld [vmem:[#allocation3 + $0x390] sm:$0xff] }
 0x295   :  { %5982 = vmatprep.subr.bf16.mxu1 %v5981_v4  ;;  %5331 = vmatmul.mubr.f32.vlgmr.msra.gmra.mrb[48].mxu0 %v3677_v6  ;;  %v1774_v6 = vld [vmem:[#allocation3 + $0x3a0] sm:$0xff] }
 0x296   :  { %6452 = vmatpush3.bf16.msra.mxu0 %v6898_v33  ;;  %5333 = vmatprep.mubr.f32.mxu0 %v3678_v9  ;;  %v6105_v9 = vpack.c.bf16 %v1775_v7, %v1774_v6  ;;  %v2167_v6 = vld [vmem:[#allocation3 + $0x4a8] sm:$0xff] }
 0x297   :  { %6454 = vmatprep.subr.bf16.mxu0 %v6904_v42 }
 0x298   :  { %5984 = vmatpush3.bf16.msra.mxu1 %v5981_v4 }
 0x299   :  { %5986 = vmatprep.subr.bf16.mxu1 %v5985_v10  ;;  %5334 = vmatmul.mubr.f32.gmra.mrb[50].mxu0 %v3679_v13  ;;  %v6109_v13 = vpack.c.bf16 %v1777_v12, %v1776_v11  ;;  %v2169_v11 = vld [vmem:[#allocation3 + $0x4b8] sm:$0xff] }
 0x29a   :  { %6456 = vmatpush3.bf16.msra.mxu0 %v6904_v42  ;;  %5406 = vmatprep.mubr.f32.mxu0 %v3680_v15  ;;  %v3685_v15 = vld [vmem:[%s7474_s4 + $0x1c8] sm:$0xff] }
 0x29b   :  { %6458 = vmatprep.subr.bf16.mxu0 %v6910_v51 }
 0x29c   :  { %5988 = vmatpush3.bf16.msra.mxu1 %v5985_v10 }
 0x29d   :  { %5990 = vmatprep.subr.bf16.mxu1 %v5989_v16 }
 0x29e   :  { %6460 = vmatpush3.bf16.msra.mxu0 %v6910_v51 }
 0x29f   :  { %6462 = vmatprep.subr.bf16.mxu0 %v6916_v60 }
 0x2a0   :  { %5992 = vmatpush3.bf16.msra.mxu1 %v5989_v16  ;;  %v1778_v16 = vld [vmem:[#allocation3 + $0x3c0] sm:$0xff] }
 0x2a1   :  { %5994 = vmatprep.subr.bf16.mxu1 %v5993_v19 }
 0x2a2   :  { %6464 = vmatpush3.bf16.msra.mxu0 %v6916_v60 }
 0x2a3   :  { %6466 = vmatprep.subr.bf16.mxu0 %v6922_v5 }
 0x2a4   :  { %5996 = vmatpush3.bf16.msra.mxu1 %v5993_v19  ;;  %v6113_v19 = vpack.c.bf16 %v1779_v17, %v1778_v16  ;;  %v2172_v17 = vld [vmem:[#allocation3 + $0x4d0] sm:$0xff] }
 0x2a5   :  { %5998 = vmatprep.subr.bf16.mxu1 %v5997_v23 }
 0x2a6   :  { %6468 = vmatpush3.bf16.msra.mxu0 %v6922_v5 }
 0x2a7   :  { %6470 = vmatprep.subr.bf16.mxu0 %v6928_v14 }
 0x2a8   :  { %6000 = vmatpush3.bf16.msra.mxu1 %v5997_v23  ;;  %v7347_v30 = vpop.f32.mrb[24].mxu0  ;;  %v3687_v23 = vld [vmem:[%s7474_s4 + $0x1d8] sm:$0xff] }
 0x2a9   :  { %6034 = vmatprep.subr.bf16.mxu1 %v6033_v27  ;;  %v1554_v32 = vpop.f32.mrb[25].mxu0 }
 0x2aa   :  { %6472 = vmatpush3.bf16.msra.mxu0 %v6928_v14 }
 0x2ab   :  { %4837 = vmatmul.mubr.f32.vlgmr.msra.gmra.mrb[16].mxu1 %v7310_v57  ;;  %6474 = vmatprep.subr.bf16.mxu0 %v6934_v24  ;;  %v1588_v57 = vld [vmem:[#allocation3 + $0x370] sm:$0xff] }
 0x2ac   :  { %6036 = vmatpush3.bf16.msra.mxu1 %v6033_v27  ;;  %4839 = vmatprep.mubr.f32.mxu1 %v7318_v1  ;;  %v7353_v36 = vpop.f32.mrb[26].mxu0  ;;  %v6061_v59 = vpack.c.bf16 %v1589_v58, %v1588_v57  ;;  %v1773_v1 = vld [vmem:[#allocation3 + $0x398] sm:$0xff]  ;;  %v1783_v27 = vld [vmem:[#allocation3 + $0x3e8] sm:$0xff] }
 0x2ad   :  { %6038 = vmatprep.subr.bf16.mxu1 %v6037_v31  ;;  %v7355_v38 = vpop.f32.mrb[27].mxu0  ;;  %v6101_v3 = vpack.c.bf16 %v1773_v1, %v1772_v0  ;;  %v1981_v57 = vld [vmem:[#allocation3 + $0x478] sm:$0xff] }
 0x2ae   :  { %6476 = vmatpush3.bf16.msra.mxu0 %v6934_v24  ;;  %v2165_v0 = vld [vmem:[#allocation3 + $0x498] sm:$0xff] }
 0x2af   :  { %6478 = vmatprep.subr.bf16.mxu0 %v6938_v29  ;;  %4840 = vmatmul.mubr.f32.gmra.mrb[18].mxu1 %v7316_v63  ;;  %v6097_v63 = vpack.c.bf16 %v1771_v62, %v1770_v61  ;;  %v2163_v61 = vld [vmem:[#allocation3 + $0x488] sm:$0xff] }
 0x2b0   :  { %6040 = vmatpush3.bf16.msra.mxu1 %v6037_v31  ;;  %4912 = vmatprep.mubr.f32.mxu1 %v1554_v32  ;;  %v1967_v32 = vld [vmem:[#allocation3 + $0x408] sm:$0xff] }
 0x2b1   :  { %6042 = vmatprep.subr.bf16.mxu1 %v6041_v37 }
 0x2b2   :  { %6480 = vmatpush3.bf16.msra.mxu0 %v6938_v29 }
 0x2b3   :  { %6514 = vmatprep.subr.bf16.mxu0 %v6898_v33 }
 0x2b4   :  { %6044 = vmatpush3.bf16.msra.mxu1 %v6041_v37 }
 0x2b5   :  { %6046 = vmatprep.subr.bf16.mxu1 %v6045_v41  ;;  %5407 = vmatmul.mubr.f32.vlgmr.msra.gmra.mrb[52].mxu0 %v3681_v43  ;;  %v1972_v43 = vld [vmem:[#allocation3 + $0x430] sm:$0xff] }
 0x2b6   :  { %6516 = vmatpush3.bf16.msra.mxu0 %v6898_v33  ;;  %5409 = vmatprep.mubr.f32.mxu0 %v3682_v46  ;;  %v1975_v46 = vld [vmem:[#allocation3 + $0x448] sm:$0xff] }
 0x2b7   :  { %6518 = vmatprep.subr.bf16.mxu0 %v6904_v42  ;;  %v6177_v48 = vpack.c.bf16 %v1975_v46, %v1974_v45  ;;  %v2370_v46 = vld [vmem:[#allocation3 + $0x560] sm:$0xff] }
 0x2b8   :  { %6048 = vmatpush3.bf16.msra.mxu1 %v6045_v41 }
 0x2b9   :  { %6050 = vmatprep.subr.bf16.mxu1 %v6049_v47  ;;  %5410 = vmatmul.mubr.f32.gmra.mrb[54].mxu0 %v3683_v50  ;;  %v1977_v50 = vld [vmem:[#allocation3 + $0x458] sm:$0xff] }
 0x2ba   :  { %6520 = vmatpush3.bf16.msra.mxu0 %v6904_v42  ;;  %5482 = vmatprep.mubr.f32.mxu0 %v3684_v52  ;;  %v6181_v52 = vpack.c.bf16 %v1977_v50, %v1976_v49  ;;  %v2373_v49 = vld [vmem:[#allocation3 + $0x578] sm:$0xff] }
 0x2bb   :  { %6522 = vmatprep.subr.bf16.mxu0 %v6910_v51 }
 0x2bc   :  { %6052 = vmatpush3.bf16.msra.mxu1 %v6049_v47  ;;  %v3689_v47 = vld [vmem:[%s7474_s4 + $0x1e8] sm:$0xff] }
 0x2bd   :  { %6054 = vmatprep.subr.bf16.mxu1 %v6053_v53 }
 0x2be   :  { %6524 = vmatpush3.bf16.msra.mxu0 %v6910_v51 }
 0x2bf   :  { %6526 = vmatprep.subr.bf16.mxu0 %v6916_v60 }
 0x2c0   :  { %6056 = vmatpush3.bf16.msra.mxu1 %v6053_v53  ;;  %v1978_v53 = vld [vmem:[#allocation3 + $0x460] sm:$0xff] }
 0x2c1   :  { %6058 = vmatprep.subr.bf16.mxu1 %v6057_v56  ;;  %v6185_v55 = vpack.c.bf16 %v1979_v54, %v1978_v53  ;;  %v2556_v54 = vld [vmem:[#allocation3 + $0x590] sm:$0xff] }
 0x2c2   :  { %6528 = vmatpush3.bf16.msra.mxu0 %v6916_v60 }
 0x2c3   :  { %6530 = vmatprep.subr.bf16.mxu0 %v6922_v5 }
 0x2c4   :  { %6060 = vmatpush3.bf16.msra.mxu1 %v6057_v56  ;;  %v1980_v56 = vld [vmem:[#allocation3 + $0x470] sm:$0xff] }
 0x2c5   :  { %6062 = vmatprep.subr.bf16.mxu1 %v6061_v59  ;;  %v6189_v58 = vpack.c.bf16 %v1981_v57, %v1980_v56 }
 0x2c6   :  { %6532 = vmatpush3.bf16.msra.mxu0 %v6922_v5 }
 0x2c7   :  { %6534 = vmatprep.subr.bf16.mxu0 %v6928_v14 }
 0x2c8   :  { %6064 = vmatpush3.bf16.msra.mxu1 %v6061_v59  ;;  %v7384_v2 = vpop.f32.mrb[28].mxu0  ;;  %v2162_v59 = vld [vmem:[#allocation3 + $0x480] sm:$0xff] }
 0x2c9   :  { %6098 = vmatprep.subr.bf16.mxu1 %v6097_v63  ;;  %v1750_v4 = vpop.f32.mrb[29].mxu0  ;;  %v6225_v62 = vpack.c.bf16 %v2163_v61, %v2162_v59  ;;  %v2558_v59 = vld [vmem:[#allocation3 + $0x5a0] sm:$0xff]  ;;  %v2559_v61 = vld [vmem:[#allocation3 + $0x5a8] sm:$0xff] }
 0x2ca   :  { %6536 = vmatpush3.bf16.msra.mxu0 %v6928_v14 }
 0x2cb   :  { %4913 = vmatmul.mubr.f32.vlgmr.msra.gmra.mrb[16].mxu1 %v7347_v30  ;;  %6538 = vmatprep.subr.bf16.mxu0 %v6934_v24  ;;  %v1785_v30 = vld [vmem:[#allocation3 + $0x3f8] sm:$0xff] }
 0x2cc   :  { %6100 = vmatpush3.bf16.msra.mxu1 %v6097_v63  ;;  %4915 = vmatprep.mubr.f32.mxu1 %v7355_v38  ;;  %v7390_v8 = vpop.f32.mrb[30].mxu0  ;;  %v6125_v31 = vpack.c.bf16 %v1785_v30, %v1784_v20  ;;  %v2164_v63 = vld [vmem:[#allocation3 + $0x490] sm:$0xff] }
 0x2cd   :  { %6102 = vmatprep.subr.bf16.mxu1 %v6101_v3  ;;  %v7392_v10 = vpop.f32.mrb[31].mxu0  ;;  %v2360_v30 = vld [vmem:[#allocation3 + $0x510] sm:$0xff] }
 0x2ce   :  { %6540 = vmatpush3.bf16.msra.mxu0 %v6934_v24 }
 0x2cf   :  { %6542 = vmatprep.subr.bf16.mxu0 %v6938_v29  ;;  %4916 = vmatmul.mubr.f32.gmra.mrb[18].mxu1 %v7353_v36 }
 0x2d0   :  { %6104 = vmatpush3.bf16.msra.mxu1 %v6101_v3  ;;  %4988 = vmatprep.mubr.f32.mxu1 %v1750_v4  ;;  %v2166_v4 = vld [vmem:[#allocation3 + $0x4a0] sm:$0xff] }
 0x2d1   :  { %6106 = vmatprep.subr.bf16.mxu1 %v6105_v9 }
 0x2d2   :  { %6544 = vmatpush3.bf16.msra.mxu0 %v6938_v29 }
 0x2d3   :  { %6578 = vmatprep.subr.bf16.mxu0 %v6898_v33 }
 0x2d4   :  { %6108 = vmatpush3.bf16.msra.mxu1 %v6105_v9 }
 0x2d5   :  { %6110 = vmatprep.subr.bf16.mxu1 %v6109_v13  ;;  %5483 = vmatmul.mubr.f32.vlgmr.msra.gmra.mrb[56].mxu0 %v3685_v15  ;;  %v2171_v15 = vld [vmem:[#allocation3 + $0x4c8] sm:$0xff] }
 0x2d6   :  { %6580 = vmatpush3.bf16.msra.mxu0 %v6898_v33  ;;  %5485 = vmatprep.mubr.f32.mxu0 %v3686_v18  ;;  %v1782_v33 = vld [vmem:[#allocation3 + $0x3e0] sm:$0xff]  ;;  %v2173_v18 = vld [vmem:[#allocation3 + $0x4d8] sm:$0xff] }
 0x2d7   :  { %6582 = vmatprep.subr.bf16.mxu0 %v6904_v42  ;;  %v6121_v28 = vpack.c.bf16 %v1783_v27, %v1782_v33  ;;  %v2358_v27 = vld [vmem:[#allocation3 + $0x500] sm:$0xff] }
 0x2d8   :  { %6112 = vmatpush3.bf16.msra.mxu1 %v6109_v13  ;;  %v2170_v13 = vld [vmem:[#allocation3 + $0x4c0] sm:$0xff] }
 0x2d9   :  { %6114 = vmatprep.subr.bf16.mxu1 %v6113_v19  ;;  %5486 = vmatmul.mubr.f32.gmra.mrb[58].mxu0 %v3687_v23  ;;  %v6241_v16 = vpack.c.bf16 %v2171_v15, %v2170_v13  ;;  %v6249_v23 = vpack.c.bf16 %v2175_v22, %v2174_v21  ;;  %v2568_v15 = vld [vmem:[#allocation3 + $0x5f0] sm:$0xff] }
 0x2da   :  { %6584 = vmatpush3.bf16.msra.mxu0 %v6904_v42  ;;  %5558 = vmatprep.mubr.f32.mxu0 %v3688_v25  ;;  %v1966_v42 = vld [vmem:[#allocation3 + $0x400] sm:$0xff]  ;;  %v2176_v25 = vld [vmem:[#allocation3 + $0x4f0] sm:$0xff] }
 0x2db   :  { %6586 = vmatprep.subr.bf16.mxu0 %v6910_v51  ;;  %v6161_v34 = vpack.c.bf16 %v1967_v32, %v1966_v42  ;;  %v2752_v22 = vld [vmem:[#allocation3 + $0x610] sm:$0xff] }
 0x2dc   :  { %6116 = vmatpush3.bf16.msra.mxu1 %v6113_v19  ;;  %v6245_v19 = vpack.c.bf16 %v2173_v18, %v2172_v17  ;;  %v2750_v18 = vld [vmem:[#allocation3 + $0x600] sm:$0xff] }
 0x2dd   :  { %6118 = vmatprep.subr.bf16.mxu1 %v6117_v26 }
 0x2de   :  { %6588 = vmatpush3.bf16.msra.mxu0 %v6910_v51  ;;  %v1969_v51 = vld [vmem:[#allocation3 + $0x418] sm:$0xff] }
 0x2df   :  { %6590 = vmatprep.subr.bf16.mxu0 %v6916_v60  ;;  %v6165_v37 = vpack.c.bf16 %v1969_v51, %v1968_v35  ;;  %v2362_v35 = vld [vmem:[#allocation3 + $0x520] sm:$0xff]  ;;  %v2363_v51 = vld [vmem:[#allocation3 + $0x528] sm:$0xff] }
 0x2e0   :  { %6120 = vmatpush3.bf16.msra.mxu1 %v6117_v26  ;;  %v2177_v26 = vld [vmem:[#allocation3 + $0x4f8] sm:$0xff] }
 0x2e1   :  { %6122 = vmatprep.subr.bf16.mxu1 %v6121_v28  ;;  %v6253_v33 = vpack.c.bf16 %v2177_v26, %v2176_v25 }
 0x2e2   :  { %6592 = vmatpush3.bf16.msra.mxu0 %v6916_v60  ;;  %v1970_v60 = vld [vmem:[#allocation3 + $0x420] sm:$0xff] }
 0x2e3   :  { %6594 = vmatprep.subr.bf16.mxu0 %v6922_v5  ;;  %v6169_v40 = vpack.c.bf16 %v1971_v39, %v1970_v60  ;;  %v2364_v60 = vld [vmem:[#allocation3 + $0x530] sm:$0xff]  ;;  %v2365_v39 = vld [vmem:[#allocation3 + $0x538] sm:$0xff] }
 0x2e4   :  { %6124 = vmatpush3.bf16.msra.mxu1 %v6121_v28  ;;  %v2359_v28 = vld [vmem:[#allocation3 + $0x508] sm:$0xff] }
 0x2e5   :  { %6126 = vmatprep.subr.bf16.mxu1 %v6125_v31  ;;  %v6289_v20 = vpack.c.bf16 %v2359_v28, %v2358_v27  ;;  %v2754_v27 = vld [vmem:[#allocation3 + $0x620] sm:$0xff]  ;;  %v2755_v28 = vld [vmem:[#allocation3 + $0x628] sm:$0xff] }
 0x2e6   :  { %6596 = vmatpush3.bf16.msra.mxu0 %v6922_v5 }
 0x2e7   :  { %6598 = vmatprep.subr.bf16.mxu0 %v6928_v14 }
 0x2e8   :  { %6128 = vmatpush3.bf16.msra.mxu1 %v6125_v31  ;;  %v7421_v36 = vpop.f32.mrb[32].mxu0  ;;  %v2361_v31 = vld [vmem:[#allocation3 + $0x518] sm:$0xff] }
 0x2e9   :  { %6162 = vmatprep.subr.bf16.mxu1 %v6161_v34  ;;  %v1946_v38 = vpop.f32.mrb[33].mxu0  ;;  %v6293_v32 = vpack.c.bf16 %v2361_v31, %v2360_v30  ;;  %v6425_v30 = vpack.c.bf16 %v2755_v28, %v2754_v27  ;;  %v3150_v27 = vld [vmem:[#allocation3 + $0x740] sm:$0xff]  ;;  %v3151_v28 = vld [vmem:[#allocation3 + $0x748] sm:$0xff] }
 0x2ea   :  { %6600 = vmatpush3.bf16.msra.mxu0 %v6928_v14  ;;  %v6173_v14 = vpack.c.bf16 %v1973_v44, %v1972_v43  ;;  %v2368_v44 = vld [vmem:[#allocation3 + $0x550] sm:$0xff] }
 0x2eb   :  { %4989 = vmatmul.mubr.f32.vlgmr.msra.gmra.mrb[16].mxu1 %v7384_v2  ;;  %6602 = vmatprep.subr.bf16.mxu0 %v6934_v24  ;;  %v6229_v2 = vpack.c.bf16 %v2165_v0, %v2164_v63  ;;  %v6361_v63 = vpack.c.bf16 %v2559_v61, %v2558_v59  ;;  %v2954_v59 = vld [vmem:[#allocation3 + $0x6c0] sm:$0xff]  ;;  %v2955_v61 = vld [vmem:[#allocation3 + $0x6c8] sm:$0xff] }
 0x2ec   :  { %6164 = vmatpush3.bf16.msra.mxu1 %v6161_v34  ;;  %4991 = vmatprep.mubr.f32.mxu1 %v7392_v10  ;;  %v5031_v5 = vpop.f32.mrb[34].mxu0  ;;  %v2168_v10 = vld [vmem:[#allocation3 + $0x4b0] sm:$0xff] }
 0x2ed   :  { %6166 = vmatprep.subr.bf16.mxu1 %v6165_v37  ;;  %v1956_v41 = vpop.f32.mrb[35].mxu0  ;;  %v6237_v12 = vpack.c.bf16 %v2169_v11, %v2168_v10  ;;  %v2566_v11 = vld [vmem:[#allocation3 + $0x5e0] sm:$0xff] }
 0x2ee   :  { %6604 = vmatpush3.bf16.msra.mxu0 %v6934_v24  ;;  %v3690_v24 = vld [vmem:[%s7474_s4 + $0x1f0] sm:$0xff] }
 0x2ef   :  { %6606 = vmatprep.subr.bf16.mxu0 %v6938_v29  ;;  %4992 = vmatmul.mubr.f32.gmra.mrb[18].mxu1 %v7390_v8  ;;  %v6233_v8 = vpack.c.bf16 %v2167_v6, %v2166_v4  ;;  %v2562_v4 = vld [vmem:[#allocation3 + $0x5c0] sm:$0xff]  ;;  %v2563_v6 = vld [vmem:[#allocation3 + $0x5c8] sm:$0xff] }
 0x2f0   :  { %6168 = vmatpush3.bf16.msra.mxu1 %v6165_v37  ;;  %5064 = vmatprep.mubr.f32.mxu1 %v1946_v38  ;;  %v6297_v37 = vpack.c.bf16 %v2363_v51, %v2362_v35  ;;  %v2758_v35 = vld [vmem:[#allocation3 + $0x640] sm:$0xff]  ;;  %v2759_v51 = vld [vmem:[#allocation3 + $0x648] sm:$0xff] }
 0x2f1   :  { %6170 = vmatprep.subr.bf16.mxu1 %v6169_v40 }
 0x2f2   :  { %6608 = vmatpush3.bf16.msra.mxu0 %v6938_v29  ;;  %v3691_v29 = vld [vmem:[%s7474_s4 + $0x1f8] sm:$0xff] }
 0x2f4   :  { %6172 = vmatpush3.bf16.msra.mxu1 %v6169_v40  ;;  %v2366_v40 = vld [vmem:[#allocation3 + $0x540] sm:$0xff] }
 0x2f5   :  { %6174 = vmatprep.subr.bf16.mxu1 %v6173_v14  ;;  %5559 = vmatmul.mubr.f32.vlgmr.msra.gmra.mrb[60].mxu0 %v3689_v47  ;;  %v2371_v47 = vld [vmem:[#allocation3 + $0x568] sm:$0xff] }
 0x2f6   :  { %5561 = vmatprep.mubr.f32.mxu0 %v3690_v24  ;;  %v6313_v24 = vpack.c.bf16 %v2371_v47, %v2370_v46  ;;  %v2948_v47 = vld [vmem:[#allocation3 + $0x690] sm:$0xff] }
 0x2f8   :  { %6176 = vmatpush3.bf16.msra.mxu1 %v6173_v14  ;;  %v2369_v14 = vld [vmem:[#allocation3 + $0x558] sm:$0xff] }
 0x2f9   :  { %6178 = vmatprep.subr.bf16.mxu1 %v6177_v48  ;;  %5562 = vmatmul.mubr.f32.gmra.mrb[62].mxu0 %v3691_v29  ;;  %v6309_v45 = vpack.c.bf16 %v2369_v14, %v2368_v44  ;;  %v2554_v29 = vld [vmem:[#allocation3 + $0x580] sm:$0xff] }
 0x2fa   :  { %v2946_v14 = vld [vmem:[#allocation3 + $0x680] sm:$0xff] }
 0x2fc   :  { %6180 = vmatpush3.bf16.msra.mxu1 %v6177_v48  ;;  %v2372_v48 = vld [vmem:[#allocation3 + $0x570] sm:$0xff] }
 0x2fd   :  { %6182 = vmatprep.subr.bf16.mxu1 %v6181_v52  ;;  %v6317_v50 = vpack.c.bf16 %v2373_v49, %v2372_v48 }
 0x300   :  { %6184 = vmatpush3.bf16.msra.mxu1 %v6181_v52  ;;  %v2555_v52 = vld [vmem:[#allocation3 + $0x588] sm:$0xff] }
 0x301   :  { %6186 = vmatprep.subr.bf16.mxu1 %v6185_v55  ;;  %v6353_v53 = vpack.c.bf16 %v2555_v52, %v2554_v29  ;;  %v2950_v29 = vld [vmem:[#allocation3 + $0x6a0] sm:$0xff]  ;;  %v2951_v52 = vld [vmem:[#allocation3 + $0x6a8] sm:$0xff] }
 0x304   :  { %6188 = vmatpush3.bf16.msra.mxu1 %v6185_v55  ;;  %v2557_v55 = vld [vmem:[#allocation3 + $0x598] sm:$0xff] }
 0x305   :  { %6190 = vmatprep.subr.bf16.mxu1 %v6189_v58  ;;  %v6357_v57 = vpack.c.bf16 %v2557_v55, %v2556_v54  ;;  %v6489_v54 = vpack.c.bf16 %v2951_v52, %v2950_v29  ;;  %v3346_v29 = vld [vmem:[#allocation3 + $0x7c0] sm:$0xff]  ;;  %v3347_v52 = vld [vmem:[#allocation3 + $0x7c8] sm:$0xff] }
 0x308   :  { %6192 = vmatpush3.bf16.msra.mxu1 %v6189_v58  ;;  %v5104_v1 = vpop.f32.mrb[36].mxu0 }
 0x309   :  { %6226 = vmatprep.subr.bf16.mxu1 %v6225_v62  ;;  %v2142_v3 = vpop.f32.mrb[37].mxu0 }
 0x30b   :  { %5065 = vmatmul.mubr.f32.vlgmr.msra.gmra.mrb[16].mxu1 %v7421_v36 }
 0x30c   :  { %6228 = vmatpush3.bf16.msra.mxu1 %v6225_v62  ;;  %5067 = vmatprep.mubr.f32.mxu1 %v1956_v41  ;;  %v5107_v7 = vpop.f32.mrb[38].mxu0  ;;  %v2367_v41 = vld [vmem:[#allocation3 + $0x548] sm:$0xff] }
 0x30d   :  { %6230 = vmatprep.subr.bf16.mxu1 %v6229_v2  ;;  %v2152_v9 = vpop.f32.mrb[39].mxu0  ;;  %v6305_v43 = vpack.c.bf16 %v2367_v41, %v2366_v40  ;;  %v2764_v41 = vld [vmem:[#allocation3 + $0x670] sm:$0xff] }
 0x30f   :  { %5068 = vmatmul.mubr.f32.gmra.mrb[18].mxu1 %v5031_v5  ;;  %v6301_v5 = vpack.c.bf16 %v2365_v39, %v2364_v60  ;;  %v2762_v39 = vld [vmem:[#allocation3 + $0x660] sm:$0xff] }
 0x310   :  { %6232 = vmatpush3.bf16.msra.mxu1 %v6229_v2  ;;  %5140 = vmatprep.mubr.f32.mxu1 %v2142_v3  ;;  %v2561_v2 = vld [vmem:[#allocation3 + $0x5b8] sm:$0xff] }
 0x311   :  { %6234 = vmatprep.subr.bf16.mxu1 %v6233_v8 }
 0x314   :  { %6236 = vmatpush3.bf16.msra.mxu1 %v6233_v8  ;;  %v2564_v8 = vld [vmem:[#allocation3 + $0x5d0] sm:$0xff] }
 0x315   :  { %6238 = vmatprep.subr.bf16.mxu1 %v6237_v12 }
 0x318   :  { %6240 = vmatpush3.bf16.msra.mxu1 %v6237_v12  ;;  %v2567_v12 = vld [vmem:[#allocation3 + $0x5e8] sm:$0xff] }
 0x319   :  { %6242 = vmatprep.subr.bf16.mxu1 %v6241_v16  ;;  %v6377_v13 = vpack.c.bf16 %v2567_v12, %v2566_v11  ;;  %v3144_v12 = vld [vmem:[#allocation3 + $0x710] sm:$0xff] }
 0x31c   :  { %6244 = vmatpush3.bf16.msra.mxu1 %v6241_v16  ;;  %v2569_v16 = vld [vmem:[#allocation3 + $0x5f8] sm:$0xff] }
 0x31d   :  { %6246 = vmatprep.subr.bf16.mxu1 %v6245_v19  ;;  %v6381_v17 = vpack.c.bf16 %v2569_v16, %v2568_v15 }
 0x320   :  { %6248 = vmatpush3.bf16.msra.mxu1 %v6245_v19  ;;  %v2751_v19 = vld [vmem:[#allocation3 + $0x608] sm:$0xff] }
 0x321   :  { %6250 = vmatprep.subr.bf16.mxu1 %v6249_v23  ;;  %v6417_v21 = vpack.c.bf16 %v2751_v19, %v2750_v18  ;;  %v3146_v18 = vld [vmem:[#allocation3 + $0x720] sm:$0xff]  ;;  %v3147_v19 = vld [vmem:[#allocation3 + $0x728] sm:$0xff] }
 0x324   :  { %6252 = vmatpush3.bf16.msra.mxu1 %v6249_v23  ;;  %v2753_v23 = vld [vmem:[#allocation3 + $0x618] sm:$0xff] }
 0x325   :  { %6254 = vmatprep.subr.bf16.mxu1 %v6253_v33  ;;  %v6421_v26 = vpack.c.bf16 %v2753_v23, %v2752_v22  ;;  %v6553_v22 = vpack.c.bf16 %v3147_v19, %v3146_v18 }
 0x328   :  { %6256 = vmatpush3.bf16.msra.mxu1 %v6253_v33  ;;  %v5180_v42 = vpop.f32.mrb[40].mxu0 }
 0x329   :  { %6290 = vmatprep.subr.bf16.mxu1 %v6289_v20  ;;  %v2338_v34 = vpop.f32.mrb[41].mxu0 }
 0x32b   :  { %5141 = vmatmul.mubr.f32.vlgmr.msra.gmra.mrb[16].mxu1 %v5104_v1  ;;  %v2560_v1 = vld [vmem:[#allocation3 + $0x5b0] sm:$0xff] }
 0x32c   :  { %6292 = vmatpush3.bf16.msra.mxu1 %v6289_v20  ;;  %5143 = vmatprep.mubr.f32.mxu1 %v2152_v9  ;;  %v5183_v36 = vpop.f32.mrb[42].mxu0  ;;  %v6365_v3 = vpack.c.bf16 %v2561_v2, %v2560_v1  ;;  %v2565_v9 = vld [vmem:[#allocation3 + $0x5d8] sm:$0xff]  ;;  %v2958_v2 = vld [vmem:[#allocation3 + $0x6e0] sm:$0xff] }
 0x32d   :  { %6294 = vmatprep.subr.bf16.mxu1 %v6293_v32  ;;  %v2348_v38 = vpop.f32.mrb[43].mxu0  ;;  %v6373_v10 = vpack.c.bf16 %v2565_v9, %v2564_v8  ;;  %v3142_v9 = vld [vmem:[#allocation3 + $0x700] sm:$0xff] }
 0x32f   :  { %5144 = vmatmul.mubr.f32.gmra.mrb[18].mxu1 %v5107_v7  ;;  %v6369_v7 = vpack.c.bf16 %v2563_v6, %v2562_v4  ;;  %v2960_v6 = vld [vmem:[#allocation3 + $0x6f0] sm:$0xff] }
 0x330   :  { %6296 = vmatpush3.bf16.msra.mxu1 %v6293_v32  ;;  %5216 = vmatprep.mubr.f32.mxu1 %v2338_v34  ;;  %v2757_v32 = vld [vmem:[#allocation3 + $0x638] sm:$0xff] }
 0x331   :  { %6298 = vmatprep.subr.bf16.mxu1 %v6297_v37 }
 0x334   :  { %6300 = vmatpush3.bf16.msra.mxu1 %v6297_v37  ;;  %v2760_v37 = vld [vmem:[#allocation3 + $0x650] sm:$0xff] }
 0x335   :  { %6302 = vmatprep.subr.bf16.mxu1 %v6301_v5 }
 0x338   :  { %6304 = vmatpush3.bf16.msra.mxu1 %v6301_v5  ;;  %v2763_v5 = vld [vmem:[#allocation3 + $0x668] sm:$0xff] }
 0x339   :  { %6306 = vmatprep.subr.bf16.mxu1 %v6305_v43  ;;  %v6441_v40 = vpack.c.bf16 %v2763_v5, %v2762_v39  ;;  %v3340_v5 = vld [vmem:[#allocation3 + $0x790] sm:$0xff] }
 0x33c   :  { %6308 = vmatpush3.bf16.msra.mxu1 %v6305_v43  ;;  %v2765_v43 = vld [vmem:[#allocation3 + $0x678] sm:$0xff] }
 0x33d   :  { %6310 = vmatprep.subr.bf16.mxu1 %v6309_v45  ;;  %v6445_v44 = vpack.c.bf16 %v2765_v43, %v2764_v41 }
 0x340   :  { %6312 = vmatpush3.bf16.msra.mxu1 %v6309_v45  ;;  %v2947_v45 = vld [vmem:[#allocation3 + $0x688] sm:$0xff] }
 0x341   :  { %6314 = vmatprep.subr.bf16.mxu1 %v6313_v24  ;;  %v6481_v46 = vpack.c.bf16 %v2947_v45, %v2946_v14  ;;  %v3342_v14 = vld [vmem:[#allocation3 + $0x7a0] sm:$0xff]  ;;  %v3343_v45 = vld [vmem:[#allocation3 + $0x7a8] sm:$0xff] }
 0x344   :  { %6316 = vmatpush3.bf16.msra.mxu1 %v6313_v24  ;;  %v2949_v24 = vld [vmem:[#allocation3 + $0x698] sm:$0xff] }
 0x345   :  { %6318 = vmatprep.subr.bf16.mxu1 %v6317_v50  ;;  %v6485_v49 = vpack.c.bf16 %v2949_v24, %v2948_v47  ;;  %v6617_v47 = vpack.c.bf16 %v3343_v45, %v3342_v14 }
 0x348   :  { %6320 = vmatpush3.bf16.msra.mxu1 %v6317_v50  ;;  %v5256_v56 = vpop.f32.mrb[44].mxu0 }
 0x349   :  { %6354 = vmatprep.subr.bf16.mxu1 %v6353_v53  ;;  %v2534_v58 = vpop.f32.mrb[45].mxu0 }
 0x34b   :  { %5217 = vmatmul.mubr.f32.vlgmr.msra.gmra.mrb[16].mxu1 %v5180_v42  ;;  %v2756_v42 = vld [vmem:[#allocation3 + $0x630] sm:$0xff] }
 0x34c   :  { %6356 = vmatpush3.bf16.msra.mxu1 %v6353_v53  ;;  %5219 = vmatprep.mubr.f32.mxu1 %v2348_v38  ;;  %v5259_v62 = vpop.f32.mrb[46].mxu0  ;;  %v6429_v34 = vpack.c.bf16 %v2757_v32, %v2756_v42  ;;  %v2761_v38 = vld [vmem:[#allocation3 + $0x658] sm:$0xff]  ;;  %v3154_v32 = vld [vmem:[#allocation3 + $0x760] sm:$0xff] }
 0x34d   :  { %6358 = vmatprep.subr.bf16.mxu1 %v6357_v57  ;;  %v2544_v0 = vpop.f32.mrb[47].mxu0  ;;  %v6437_v60 = vpack.c.bf16 %v2761_v38, %v2760_v37  ;;  %v3338_v38 = vld [vmem:[#allocation3 + $0x780] sm:$0xff] }
 0x34f   :  { %5220 = vmatmul.mubr.f32.gmra.mrb[18].mxu1 %v5183_v36  ;;  %v6433_v36 = vpack.c.bf16 %v2759_v51, %v2758_v35  ;;  %v3156_v51 = vld [vmem:[#allocation3 + $0x770] sm:$0xff] }
 0x350   :  { %6360 = vmatpush3.bf16.msra.mxu1 %v6357_v57  ;;  %5292 = vmatprep.mubr.f32.mxu1 %v2534_v58  ;;  %v2953_v57 = vld [vmem:[#allocation3 + $0x6b8] sm:$0xff] }
 0x351   :  { %6362 = vmatprep.subr.bf16.mxu1 %v6361_v63 }
 0x354   :  { %6364 = vmatpush3.bf16.msra.mxu1 %v6361_v63  ;;  %v2956_v63 = vld [vmem:[#allocation3 + $0x6d0] sm:$0xff] }
 0x355   :  { %6366 = vmatprep.subr.bf16.mxu1 %v6365_v3 }
 0x358   :  { %6368 = vmatpush3.bf16.msra.mxu1 %v6365_v3  ;;  %v2959_v3 = vld [vmem:[#allocation3 + $0x6e8] sm:$0xff] }
 0x359   :  { %6370 = vmatprep.subr.bf16.mxu1 %v6369_v7  ;;  %v6505_v4 = vpack.c.bf16 %v2959_v3, %v2958_v2 }
 0x35c   :  { %6372 = vmatpush3.bf16.msra.mxu1 %v6369_v7  ;;  %v2961_v7 = vld [vmem:[#allocation3 + $0x6f8] sm:$0xff] }
 0x35d   :  { %6374 = vmatprep.subr.bf16.mxu1 %v6373_v10  ;;  %v6509_v8 = vpack.c.bf16 %v2961_v7, %v2960_v6 }
 0x360   :  { %6376 = vmatpush3.bf16.msra.mxu1 %v6373_v10  ;;  %v3143_v10 = vld [vmem:[#allocation3 + $0x708] sm:$0xff] }
 0x361   :  { %6378 = vmatprep.subr.bf16.mxu1 %v6377_v13  ;;  %v6545_v11 = vpack.c.bf16 %v3143_v10, %v3142_v9 }
 0x364   :  { %6380 = vmatpush3.bf16.msra.mxu1 %v6377_v13  ;;  %v3145_v13 = vld [vmem:[#allocation3 + $0x718] sm:$0xff] }
 0x365   :  { %6382 = vmatprep.subr.bf16.mxu1 %v6381_v17  ;;  %v6549_v16 = vpack.c.bf16 %v3145_v13, %v3144_v12 }
 0x368   :  { %6384 = vmatpush3.bf16.msra.mxu1 %v6381_v17  ;;  %v5332_v25 = vpop.f32.mrb[48].mxu0 }
 0x369   :  { %6418 = vmatprep.subr.bf16.mxu1 %v6417_v21  ;;  %v2730_v33 = vpop.f32.mrb[49].mxu0 }
 0x36b   :  { %5293 = vmatmul.mubr.f32.vlgmr.msra.gmra.mrb[16].mxu1 %v5256_v56  ;;  %v2952_v56 = vld [vmem:[#allocation3 + $0x6b0] sm:$0xff] }
 0x36c   :  { %6420 = vmatpush3.bf16.msra.mxu1 %v6417_v21  ;;  %5295 = vmatprep.mubr.f32.mxu1 %v2544_v0  ;;  %v5335_v20 = vpop.f32.mrb[50].mxu0  ;;  %v6493_v58 = vpack.c.bf16 %v2953_v57, %v2952_v56  ;;  %v2957_v0 = vld [vmem:[#allocation3 + $0x6d8] sm:$0xff]  ;;  %v3350_v57 = vld [vmem:[#allocation3 + $0x7e0] sm:$0xff] }
 0x36d   :  { %6422 = vmatprep.subr.bf16.mxu1 %v6421_v26  ;;  %v2740_v31 = vpop.f32.mrb[51].mxu0  ;;  %v6501_v1 = vpack.c.bf16 %v2957_v0, %v2956_v63  ;;  %v6746_v0 = vmov 0.0|0.0  }
 0x36e   :  { %6641 = vmatprep.subr.bf16.mxu0 %v6746_v0 }
 0x36f   :  { %5296 = vmatmul.mubr.f32.gmra.mrb[18].mxu1 %v5259_v62  ;;  %v6497_v62 = vpack.c.bf16 %v2955_v61, %v2954_v59  ;;  %v3352_v61 = vld [vmem:[#allocation3 + $0x7f0] sm:$0xff] }
 0x370   :  { %6424 = vmatpush3.bf16.msra.mxu1 %v6421_v26  ;;  %5368 = vmatprep.mubr.f32.mxu1 %v2730_v33  ;;  %v3149_v26 = vld [vmem:[#allocation3 + $0x738] sm:$0xff] }
 0x371   :  { %6426 = vmatprep.subr.bf16.mxu1 %v6425_v30 }
 0x374   :  { %6428 = vmatpush3.bf16.msra.mxu1 %v6425_v30  ;;  %v3152_v30 = vld [vmem:[#allocation3 + $0x750] sm:$0xff] }
 0x375   :  { %6430 = vmatprep.subr.bf16.mxu1 %v6429_v34 }
 0x378   :  { %6432 = vmatpush3.bf16.msra.mxu1 %v6429_v34  ;;  %v3155_v34 = vld [vmem:[#allocation3 + $0x768] sm:$0xff] }
 0x379   :  { %6434 = vmatprep.subr.bf16.mxu1 %v6433_v36  ;;  %v6569_v35 = vpack.c.bf16 %v3155_v34, %v3154_v32 }
 0x37c   :  { %6436 = vmatpush3.bf16.msra.mxu1 %v6433_v36  ;;  %v3157_v36 = vld [vmem:[#allocation3 + $0x778] sm:$0xff] }
 0x37d   :  { %6438 = vmatprep.subr.bf16.mxu1 %v6437_v60  ;;  %v6573_v37 = vpack.c.bf16 %v3157_v36, %v3156_v51 }
 0x380   :  { %6440 = vmatpush3.bf16.msra.mxu1 %v6437_v60  ;;  %v3339_v60 = vld [vmem:[#allocation3 + $0x788] sm:$0xff] }
 0x381   :  { %6442 = vmatprep.subr.bf16.mxu1 %v6441_v40  ;;  %v6609_v39 = vpack.c.bf16 %v3339_v60, %v3338_v38  ;;  %v3692_v38 = vld [vmem:[%s7476_s6] ss:$0 sm:$0xff] }
 0x384   :  { %6444 = vmatpush3.bf16.msra.mxu1 %v6441_v40  ;;  %v3341_v40 = vld [vmem:[#allocation3 + $0x798] sm:$0xff] }
 0x385   :  { %6446 = vmatprep.subr.bf16.mxu1 %v6445_v44  ;;  %v6613_v43 = vpack.c.bf16 %v3341_v40, %v3340_v5 }
 0x388   :  { %6448 = vmatpush3.bf16.msra.mxu1 %v6445_v44  ;;  %v5408_v48 = vpop.f32.mrb[52].mxu0 }
 0x389   :  { %6482 = vmatprep.subr.bf16.mxu1 %v6481_v46  ;;  %v2926_v50 = vpop.f32.mrb[53].mxu0 }
 0x38b   :  { %5369 = vmatmul.mubr.f32.vlgmr.msra.gmra.mrb[16].mxu1 %v5332_v25  ;;  %v3148_v25 = vld [vmem:[#allocation3 + $0x730] sm:$0xff] }
 0x38c   :  { %6484 = vmatpush3.bf16.msra.mxu1 %v6481_v46  ;;  %5371 = vmatprep.mubr.f32.mxu1 %v2740_v31  ;;  %v5411_v53 = vpop.f32.mrb[54].mxu0  ;;  %v6557_v33 = vpack.c.bf16 %v3149_v26, %v3148_v25  ;;  %v3153_v31 = vld [vmem:[#allocation3 + $0x758] sm:$0xff] }
 0x38d   :  { %6486 = vmatprep.subr.bf16.mxu1 %v6485_v49  ;;  %v2936_v55 = vpop.f32.mrb[55].mxu0  ;;  %v6565_v42 = vpack.c.bf16 %v3153_v31, %v3152_v30 }
 0x38f   :  { %5372 = vmatmul.mubr.f32.gmra.mrb[18].mxu1 %v5335_v20  ;;  %v6561_v20 = vpack.c.bf16 %v3151_v28, %v3150_v27 }
 0x390   :  { %6488 = vmatpush3.bf16.msra.mxu1 %v6485_v49  ;;  %5444 = vmatprep.mubr.f32.mxu1 %v2926_v50  ;;  %v3345_v49 = vld [vmem:[#allocation3 + $0x7b8] sm:$0xff] }
 0x391   :  { %6490 = vmatprep.subr.bf16.mxu1 %v6489_v54 }
 0x394   :  { %6492 = vmatpush3.bf16.msra.mxu1 %v6489_v54  ;;  %v3348_v54 = vld [vmem:[#allocation3 + $0x7d0] sm:$0xff] }
 0x395   :  { %6494 = vmatprep.subr.bf16.mxu1 %v6493_v58 }
 0x398   :  { %6496 = vmatpush3.bf16.msra.mxu1 %v6493_v58  ;;  %v3351_v58 = vld [vmem:[#allocation3 + $0x7e8] sm:$0xff] }
 0x399   :  { %6498 = vmatprep.subr.bf16.mxu1 %v6497_v62  ;;  %v6633_v59 = vpack.c.bf16 %v3351_v58, %v3350_v57  ;;  %v3515_v57 = vld [vmem:[%s7478_s8 + $0x18] sm:$0xff] }
 0x39c   :  { %6500 = vmatpush3.bf16.msra.mxu1 %v6497_v62  ;;  %v3353_v62 = vld [vmem:[#allocation3 + $0x7f8] sm:$0xff] }
 0x39d   :  { %6502 = vmatprep.subr.bf16.mxu1 %v6501_v1  ;;  %v6637_v63 = vpack.c.bf16 %v3353_v62, %v3352_v61 }
 0x3a0   :  { %6504 = vmatpush3.bf16.msra.mxu1 %v6501_v1  ;;  %v6748_v1 = vmov 0.0  }
 0x3a1   :  { %6506 = vmatprep.subr.bf16.mxu1 %v6505_v4  ;;  %5610 = vmatprep.mubr.msk.f32.mxu0 %vm6747_vm1, %v6748_v1 }
 0x3a4   :  { %6508 = vmatpush3.bf16.msra.mxu1 %v6505_v4 }
 0x3a5   :  { %6510 = vmatprep.subr.bf16.mxu1 %v6509_v8 }
 0x3a8   :  { %6512 = vmatpush3.bf16.msra.mxu1 %v6509_v8  ;;  %v5484_v15 = vpop.f32.mrb[56].mxu0 }
 0x3a9   :  { %6546 = vmatprep.subr.bf16.mxu1 %v6545_v11  ;;  %v3122_v17 = vpop.f32.mrb[57].mxu0 }
 0x3ab   :  { %5445 = vmatmul.mubr.f32.vlgmr.msra.gmra.mrb[16].mxu1 %v5408_v48  ;;  %v3344_v48 = vld [vmem:[#allocation3 + $0x7b0] sm:$0xff] }
 0x3ac   :  { %6548 = vmatpush3.bf16.msra.mxu1 %v6545_v11  ;;  %5447 = vmatprep.mubr.f32.mxu1 %v2936_v55  ;;  %v5487_v21 = vpop.f32.mrb[58].mxu0  ;;  %v6621_v50 = vpack.c.bf16 %v3345_v49, %v3344_v48  ;;  %v3349_v55 = vld [vmem:[#allocation3 + $0x7d8] sm:$0xff]  ;;  %v3512_v49 = vld [vmem:[%s7478_s8] sm:$0xff] }
 0x3ad   :  { %6550 = vmatprep.subr.bf16.mxu1 %v6549_v16  ;;  %v3132_v23 = vpop.f32.mrb[59].mxu0  ;;  %v6629_v56 = vpack.c.bf16 %v3349_v55, %v3348_v54  ;;  %v3513_v54 = vld [vmem:[%s7478_s8 + $0x8] sm:$0xff] }
 0x3af   :  { %5448 = vmatmul.mubr.f32.gmra.mrb[18].mxu1 %v5411_v53  ;;  %v6625_v53 = vpack.c.bf16 %v3347_v52, %v3346_v29  ;;  %v3514_v29 = vld [vmem:[%s7478_s8 + $0x10] sm:$0xff] }
 0x3b0   :  { %6552 = vmatpush3.bf16.msra.mxu1 %v6549_v16  ;;  %5520 = vmatprep.mubr.f32.mxu1 %v3122_v17 }
 0x3b1   :  { %6554 = vmatprep.subr.bf16.mxu1 %v6553_v22 }
 0x3b4   :  { %6556 = vmatpush3.bf16.msra.mxu1 %v6553_v22 }
 0x3b5   :  { %6558 = vmatprep.subr.bf16.mxu1 %v6557_v33 }
 0x3b8   :  { %6560 = vmatpush3.bf16.msra.mxu1 %v6557_v33 }
 0x3b9   :  { %6562 = vmatprep.subr.bf16.mxu1 %v6561_v20 }
 0x3bc   :  { %6564 = vmatpush3.bf16.msra.mxu1 %v6561_v20 }
 0x3bd   :  { %6566 = vmatprep.subr.bf16.mxu1 %v6565_v42 }
 0x3c0   :  { %6568 = vmatpush3.bf16.msra.mxu1 %v6565_v42 }
 0x3c1   :  { %6570 = vmatprep.subr.bf16.mxu1 %v6569_v35 }
 0x3c4   :  { %6572 = vmatpush3.bf16.msra.mxu1 %v6569_v35 }
 0x3c5   :  { %6574 = vmatprep.subr.bf16.mxu1 %v6573_v37 }
 0x3c8   :  { %6576 = vmatpush3.bf16.msra.mxu1 %v6573_v37  ;;  %v5560_v41 = vpop.f32.mrb[60].mxu0 }
 0x3c9   :  { %6610 = vmatprep.subr.bf16.mxu1 %v6609_v39  ;;  %v3318_v44 = vpop.f32.mrb[61].mxu0 }
 0x3cb   :  { %5521 = vmatmul.mubr.f32.vlgmr.msra.gmra.mrb[16].mxu1 %v5484_v15 }
 0x3cc   :  { %6612 = vmatpush3.bf16.msra.mxu1 %v6609_v39  ;;  %5523 = vmatprep.mubr.f32.mxu1 %v3132_v23  ;;  %v5563_v46 = vpop.f32.mrb[62].mxu0 }
 0x3cd   :  { %6614 = vmatprep.subr.bf16.mxu1 %v6613_v43  ;;  %v3328_v24 = vpop.f32.mrb[63].mxu0 }
 0x3cf   :  { %5524 = vmatmul.mubr.f32.gmra.mrb[18].mxu1 %v5487_v21 }
 0x3d0   :  { %6616 = vmatpush3.bf16.msra.mxu1 %v6613_v43  ;;  %5596 = vmatprep.mubr.f32.mxu1 %v3318_v44 }
 0x3d1   :  { %6618 = vmatprep.subr.bf16.mxu1 %v6617_v47 }
 0x3d4   :  { %6620 = vmatpush3.bf16.msra.mxu1 %v6617_v47 }
 0x3d5   :  { %6622 = vmatprep.subr.bf16.mxu1 %v6621_v50 }
 0x3d8   :  { %6624 = vmatpush3.bf16.msra.mxu1 %v6621_v50 }
 0x3d9   :  { %6626 = vmatprep.subr.bf16.mxu1 %v6625_v53 }
 0x3dc   :  { %6628 = vmatpush3.bf16.msra.mxu1 %v6625_v53 }
 0x3dd   :  { %6630 = vmatprep.subr.bf16.mxu1 %v6629_v56 }
 0x3e0   :  { %6632 = vmatpush3.bf16.msra.mxu1 %v6629_v56 }
 0x3e1   :  { %6634 = vmatprep.subr.bf16.mxu1 %v6633_v59 }
 0x3e4   :  { %6636 = vmatpush3.bf16.msra.mxu1 %v6633_v59 }
 0x3e5   :  { %6638 = vmatprep.subr.bf16.mxu1 %v6637_v63 }
 0x3e8   :  { %6640 = vmatpush3.bf16.msra.mxu1 %v6637_v63 }
 0x3eb   :  { %5597 = vmatmul.mubr.f32.vlgmr.msra.gmra.mrb[16].mxu1 %v5560_v41  ;;  %v3693_v41 = vld [vmem:[%s7477_s7] ss:$0 sm:$0xff] }
 0x3ec   :  { %5599 = vmatprep.mubr.f32.mxu1 %v3328_v24 }
 0x3ef   :  { %5600 = vmatmul.mubr.f32.gmra.mrb[18].mxu1 %v5563_v46 }
 0x4be   :  { %v5598_v2 = vpop.f32.mrb[16].mxu1 }
 0x4bf   :  { %v3420_v3 = vpop.f32.mrb[17].mxu1 }
 0x4c0   :  { %v3443_v4 = vadd.f32 %v5598_v2, %v3420_v3 }
 0x4c2   :  { %v5601_v6 = vpop.f32.mrb[18].mxu1 }
 0x4c3   :  { %v3430_v7 = vpop.f32.mrb[19].mxu1 }
 0x4c4   :  { %v3444_v8 = vadd.f32 %v3443_v4, %v3430_v7 }
 0x4c6   :  { %v3445_v9 = vadd.f32 %v5601_v6, %v3444_v8 }
 0x4c8   :  { %v3446_v10 = vrot.slane %v3445_v9, 4 }
 0x4ca   :  { %v3447_v11 = vadd.f32 %v3446_v10, %v3445_v9  ;;  %v3600_v10 = vstv %s7470_s0 }
 0x4cc   :  { %v3448_v12 = vrot.slane %v3447_v11, 2 }
 0x4ce   :  { %v3449_v13 = vadd.f32 %v3448_v12, %v3447_v11 }
 0x4d0   :  { %v3450_v15 = vrot.slane %v3449_v13, 1 }
 0x4d2   :  { %v3451_v16 = vadd.f32 %v3450_v15, %v3449_v13 }
 0x4d4   :  { %v3453_v17 = vmul.f32 0.03125, %v3451_v16 }
 0x4d6   :  { %v3454_v18 = vsub.f32 %v3420_v3, %v3453_v17  ;;  %v3455_v19 = vsub.f32 %v5598_v2, %v3453_v17  ;;  %v3456_v21 = vsub.f32 %v3430_v7, %v3453_v17  ;;  %v3457_v22 = vsub.f32 %v5601_v6, %v3453_v17  ;;  %v3520_v6 = vld [vmem:[%s7479_s9] sm:$0x3] }
 0x4d8   :  { %v3458_v23 = vmul.f32 %v3454_v18, %v3454_v18  ;;  %v3459_v25 = vmul.f32 %v3455_v19, %v3455_v19  ;;  %v3460_v26 = vmul.f32 %v3456_v21, %v3456_v21  ;;  %v3461_v27 = vmul.f32 %v3457_v22, %v3457_v22 }
 0x4da   :  { %v3462_v33 = vadd.f32 %v3459_v25, %v3458_v23 }
 0x4dc   :  { %v3463_v28 = vadd.f32 %v3462_v33, %v3460_v26 }
 0x4de   :  { %v3464_v20 = vadd.f32 %v3463_v28, %v3461_v27 }
 0x4e0   :  { %v3465_v30 = vrot.slane %v3464_v20, 4 }
 0x4e2   :  { %v3466_v31 = vadd.f32 %v3465_v30, %v3464_v20 }
 0x4e4   :  { %v3467_v42 = vrot.slane %v3466_v31, 2 }
 0x4e6   :  { %v3468_v32 = vadd.f32 %v3467_v42, %v3466_v31 }
 0x4e8   :  { %v3469_v34 = vrot.slane %v3468_v32, 1 }
 0x4ea   :  { %v3470_v35 = vadd.f32 %v3469_v34, %v3468_v32 }
 0x4ec   :  { %v3471_v51 = vmul.f32 0.03125, %v3470_v35 }
 0x4ee   :  { %v3472_v36 = vadd.f32 1e-05, %v3471_v51 }
 0x4f0   :  { %6713 = vrsqrt.f32 %v3472_v36 }
 0x4fa   :  { %v6714_v37 = vpop.eup %6713 }
 0x4fb   :  { %v3474_v60 = vmul.f32 %v6714_v37, %v3454_v18  ;;  %v3475_v39 = vmul.f32 %v6714_v37, %v3455_v19  ;;  %v3476_v5 = vmul.f32 %v6714_v37, %v3456_v21  ;;  %v3477_v40 = vmul.f32 %v6714_v37, %v3457_v22 }
 0x4fd   :  { %v3485_v43 = vmul.f32 %v3692_v38, %v3474_v60  ;;  %v3486_v44 = vmul.f32 %v3692_v38, %v3475_v39  ;;  %v3487_v14 = vmul.f32 %v3692_v38, %v3476_v5  ;;  %v3488_v45 = vmul.f32 %v3692_v38, %v3477_v40 }
 0x4ff   :  { %v3496_v46 = vadd.f32 %v3693_v41, %v3485_v43  ;;  %v3497_v47 = vadd.f32 %v3693_v41, %v3486_v44  ;;  %v3498_v24 = vadd.f32 %v3693_v41, %v3487_v14  ;;  %v3499_v48 = vadd.f32 %v3693_v41, %v3488_v45 }
 0x501   :  { %vm3502_vm2 = vcmp.gt.f32.partialorder %v3498_v24, 0.0  ;;  %v3506_v50 = vmul.f32 0.2, %v3498_v24  ;;  %vm3500_vm3 = vcmp.gt.f32.partialorder %v3496_v46, 0.0  ;;  %vm3501_vm4 = vcmp.gt.f32.partialorder %v3497_v47, 0.0 }
 0x502   :  { %v3504_v52 = vmul.f32 0.2, %v3496_v46  ;;  %v3505_v53 = vmul.f32 0.2, %v3497_v47  ;;  %vm3503_vm5 = vcmp.gt.f32.partialorder %v3499_v48, 0.0 }
 0x503   :  { %v3507_v55 = vmul.f32 0.2, %v3499_v48  ;;  %v3510_v56 = vsel %vm3502_vm2, %v3498_v24, %v3506_v50 }
 0x504   :  { %v3508_v58 = vsel %vm3500_vm3, %v3496_v46, %v3504_v52  ;;  %v3509_v59 = vsel %vm3501_vm4, %v3497_v47, %v3505_v53  ;;  %v3518_v61 = vmul.f32 %v3514_v29, %v3510_v56 }
 0x505   :  { %v3516_v62 = vmul.f32 %v3512_v49, %v3508_v58  ;;  %v3517_v63 = vmul.f32 %v3513_v54, %v3509_v59  ;;  %v3511_v1 = vsel %vm3503_vm5, %v3499_v48, %v3507_v55 }
 0x506   :  { %v3519_v2 = vmul.f32 %v3515_v57, %v3511_v1 }
 0x507   :  { %v6642_v3 = vpack.c.bf16 %v3517_v63, %v3516_v62 }
 0x508   :  { %v6645_v4 = vpack.c.bf16 %v3519_v2, %v3518_v61 }
 0x509   :  { %6643 = vmatpush3.bf16.msra.mxu0 %v6642_v3 }
 0x50a   :  { %6644 = vmatprep.subr.bf16.mxu0 %v6746_v0 }
 0x50d   :  { %6646 = vmatpush3.bf16.msra.mxu0 %v6645_v4 }
 0x510   :  { %5611 = vmatmul.mubr.msk.f32.vlgmr.msra.gmra.mrb[64].mxu0 %vm3521_vm6, %v3520_v6 }
 0x5e3   :  { %v3591_v7 = vpop.f32.mrb[64].mxu0 }
 0x5e4   :  { %v5612_v8 = vpop.f32.mrb[65].mxu0  ;;  %v3596_v9 = vsel %vm3595_vm7, %v3591_v7, 0.0 }
 0x5e5   :  { %3597 = vadd.xlane.f32.xlu0 %v3596_v9 }
 0x672   :  { %v3598_v11 = vpop.xlane.xlu0 %3597 }
 0x673   :  { %v3601_v12 = vadd.f32 %v3600_v10, %v3598_v11 }
 0x675   :  { %v3602_v13 = vsub.f32 0.0, %v3601_v12 }
 0x677   :  { %v3603_v0 = vmul.f32 1.442695, %v3602_v13 }
 0x679   :  { %6715 = vpow2.f32 %v3603_v0 }
 0x683   :  { %v6716_v15 = vpop.eup %6715 }
 0x684   :  { %v3605_v16 = vadd.f32 1.0, %v6716_v15 }
 0x686   :  { %6717 = vrcp.f32 %v3605_v16 }
 0x690   :  { %v6718_v17 = vpop.eup %6717 }
 0x691   :  { %3609 = vst.msk [vmem:[%s7480_s10] sm:$0x3] %vm3608_vm8, %v6718_v17 }
 0x692   :  { %3614 = vsyncpa [#allocation4], 1 }

</bundles_post_ra>
